<compile_context>
chip_gen: v7x
topology: tpu7x:2x2x1
jax: 0.10.0
libtpu: 0.0.40
codegen_flags: <defaults>
</compile_context>

<pallas_src>
import functools

import jax
import jax.numpy as jnp
from jax import lax
from jax.experimental import pallas as pl
from jax.experimental.pallas import tpu as pltpu


def _round_up(x, m):
    return (x + m - 1) // m * m


def _csdn_kernel(x_hbm, dw_ref, pw_ref, pb_ref, o_ref, xs_ref, sem_ref,
                 *, W, TH, CH, Cin, nR, PADW):
    """One (batch, row-tile) step.

    x_hbm  : (B, Cin, H*W)          raw HBM ref (memory_space=pl.ANY)
    dw_ref : (Cin, 9)               depthwise 3x3 taps, row-major over (dy, dx)
    pw_ref : (Cout, Cin)            pointwise weights
    pb_ref : (Cout, 1)              pointwise bias (depthwise bias folded in)
    o_ref  : (1, Cout, TH*W)        output row-tile (auto-pipelined writeback)
    xs_ref : (2, Cin, 2*PADW+TH*W)  double-buffered padded landing scratch:
                                    [.. top halo row | TH tile rows | bottom halo row ..]
    sem_ref: (2, 3) DMA semaphores  indexed [slot, {main, top, bot}]
    """
    TB = TH * W          # lanes per row-tile
    LCH = CH * W         # lanes per compute chunk (chunk boundary == row boundary)
    b = pl.program_id(0)
    r = pl.program_id(1)
    slot = r % 2
    nxt = 1 - slot

    # ---------------- manual DMA helpers (all dests 128-lane aligned) --------
    def start_main(rr, s):
        pltpu.make_async_copy(
            x_hbm.at[b, :, pl.ds(rr * TB, TB)],
            xs_ref.at[s, :, pl.ds(PADW, TB)],
            sem_ref.at[s, 0]).start()

    def start_top(rr, s):            # only called with rr >= 1  (rr*TB >= PADW)
        pltpu.make_async_copy(
            x_hbm.at[b, :, pl.ds(rr * TB - PADW, PADW)],
            xs_ref.at[s, :, pl.ds(0, PADW)],
            sem_ref.at[s, 1]).start()

    def start_bot(rr, s):            # only called with rr < nR-1
        pltpu.make_async_copy(
            x_hbm.at[b, :, pl.ds((rr + 1) * TB, PADW)],
            xs_ref.at[s, :, pl.ds(PADW + TB, PADW)],
            sem_ref.at[s, 2]).start()

    def wait_main(s):
        pltpu.make_async_copy(
            x_hbm.at[0, :, pl.ds(0, TB)],
            xs_ref.at[s, :, pl.ds(PADW, TB)],
            sem_ref.at[s, 0]).wait()

    def wait_top(s):
        pltpu.make_async_copy(
            x_hbm.at[0, :, pl.ds(0, PADW)],
            xs_ref.at[s, :, pl.ds(0, PADW)],
            sem_ref.at[s, 1]).wait()

    def wait_bot(s):
        pltpu.make_async_copy(
            x_hbm.at[0, :, pl.ds(0, PADW)],
            xs_ref.at[s, :, pl.ds(PADW + TB, PADW)],
            sem_ref.at[s, 2]).wait()

    def zero_top(s):                 # only the W lanes that are actually read
        xs_ref[s, :, pl.ds(PADW - W, W)] = jnp.zeros((Cin, W), jnp.float32)

    def zero_bot(s):
        xs_ref[s, :, pl.ds(PADW + TB, W)] = jnp.zeros((Cin, W), jnp.float32)

    # ---------------- priming: first row-tile of this batch on this core -----
    @pl.when(r == 0)
    def _():
        start_main(0, 0)
        zero_top(0)                  # image top border: dy=-1 taps read zeros
        if nR > 1:
            start_bot(0, 0)
        else:
            zero_bot(0)

    # ---------------- prefetch next row-tile (same batch) into other slot ----
    @pl.when(r + 1 < nR)
    def _():
        start_main(r + 1, nxt)
        start_top(r + 1, nxt)        # r+1 >= 1, so a top halo row always exists

    if nR > 2:
        @pl.when(r + 1 < nR - 1)
        def _():
            start_bot(r + 1, nxt)

    if nR > 1:
        @pl.when(r + 1 == nR - 1)
        def _():
            zero_bot(nxt)            # image bottom border for the last tile

    # ---------------- wait for this row-tile's landing buffers ---------------
    wait_main(slot)

    @pl.when(r > 0)
    def _():
        wait_top(slot)

    @pl.when(r < nR - 1)
    def _():
        wait_bot(slot)

    # ---------------- compute -------------------------------------------------
    dw = dw_ref[...]                  # (Cin, 9)
    pw = pw_ref[...]                  # (Cout, Cin)
    pb = pb_ref[...]                  # (Cout, 1)
    xv = xs_ref.at[slot]              # (Cin, 2*PADW + TB) view of current slot

    # per-(dy,dx) scalar weights, grouped by dx column
    w_nw, w_n, w_ne = dw[:, 0:1], dw[:, 1:2], dw[:, 2:3]
    w_w, w_c, w_e = dw[:, 3:4], dw[:, 4:5], dw[:, 5:6]
    w_sw, w_s, w_se = dw[:, 6:7], dw[:, 7:8], dw[:, 8:9]

    # in-kernel border masks (column index within an image row)
    col = lax.broadcasted_iota(jnp.int32, (1, LCH), 1) % W
    mask_l = col >= 1                 # dx=-1 tap stays inside the row
    mask_r = col <= W - 2             # dx=+1 tap stays inside the row
    zcol = jnp.zeros((Cin, 1), jnp.float32)

    n_chunks = TB // LCH
    for c in range(n_chunks):
        off = c * LCH
        # three dy-bands of the flattened padded scratch (contiguous slices)
        top = xv[:, PADW - W + off:PADW - W + off + LCH]     # rows shifted dy=-1
        mid = xv[:, PADW + off:PADW + off + LCH]             # dy = 0
        bot = xv[:, PADW + W + off:PADW + W + off + LCH]     # dy = +1

        # depthwise 3x3: sum over dy per dx-group, shift + mask once per group
        left = top * w_nw + mid * w_w + bot * w_sw
        ctr = top * w_n + mid * w_c + bot * w_s
        right = top * w_ne + mid * w_e + bot * w_se
        left_sh = jnp.concatenate([zcol, left[:, :LCH - 1]], axis=1)   # value at p-1
        right_sh = jnp.concatenate([right[:, 1:], zcol], axis=1)       # value at p+1
        acc = (ctr
               + jnp.where(mask_l, left_sh, 0.0)
               + jnp.where(mask_r, right_sh, 0.0))                     # (Cin, LCH)

        # pointwise 1x1 on the MXU (depthwise bias folded into pb)
        y = jnp.dot(pw, acc, preferred_element_type=jnp.float32) + pb  # (Cout, LCH)
        o_ref[0, :, off:off + LCH] = y.astype(o_ref.dtype)


def _pick_tile_rows(H, W, Cin, Cout, budget_bytes=8 << 20):
    padw = _round_up(W, 128)
    divs = [d for d in range(1, H + 1) if H % d == 0]
    ok = [d for d in divs if (d * W) % 128 == 0 or d == H]
    if not ok:
        return H
    fit = [d for d in ok
           if 4 * (2 * Cin * (d * W + 2 * padw) + 2 * Cout * d * W) <= budget_bytes]
    return max(fit) if fit else min(ok)


def _pick_chunk_rows(tile_rows, W):
    divs = [d for d in range(1, tile_rows + 1) if tile_rows % d == 0]
    ok = [d for d in divs
          if d * W <= 2048 and ((d * W) % 128 == 0 or d == tile_rows)]
    return max(ok) if ok else tile_rows


def csdn_tem(x_nchw, dw, db, pw, pb, *, tile_rows=None, chunk_rows=None):
    """Forward pass of CSDN_Tem.

    x_nchw: (B, Cin, H, W) float32
    dw    : (Cin, 1, 3, 3) depthwise conv weight (PyTorch layout)
    db    : (Cin,)         depthwise conv bias
    pw    : (Cout, Cin, 1, 1) pointwise conv weight (PyTorch layout)
    pb    : (Cout,)        pointwise conv bias
    returns (B, Cout, H, W)
    """
    B, Cin, H, W = x_nchw.shape
    Cout = pw.shape[0]
    N = H * W

    if tile_rows is None:
        tile_rows = _pick_tile_rows(H, W, Cin, Cout)
    assert H % tile_rows == 0, "H must be divisible by tile_rows"
    if chunk_rows is None:
        chunk_rows = _pick_chunk_rows(tile_rows, W)
    assert tile_rows % chunk_rows == 0

    nR = H // tile_rows
    TB = tile_rows * W
    PADW = _round_up(W, 128)
    if nR > 1:
        assert TB % 128 == 0, "tile_rows*W must be a multiple of 128 when H is split"
        assert TB >= PADW, "tile_rows*W must be >= round_up(W,128) when H is split"

    # Free re-layouts (contiguous reshapes only — no transpose, no pad).
    x_flat = x_nchw.reshape(B, Cin, N).astype(jnp.float32)
    dw_k = dw.reshape(Cin, 9).astype(jnp.float32)
    pw_k = pw.reshape(Cout, Cin).astype(jnp.float32)
    # Fold depthwise bias into pointwise bias: pw @ (d + db) + pb = pw@d + (pw@db + pb)
    pb_k = (pb.astype(jnp.float32) + pw_k @ db.astype(jnp.float32)).reshape(Cout, 1)

    kernel = functools.partial(_csdn_kernel, W=W, TH=tile_rows, CH=chunk_rows,
                               Cin=Cin, nR=nR, PADW=PADW)

    flops = B * N * (18 * Cin + 2 * Cin * Cout)
    bytes_accessed = 4 * (B * Cin * N + B * Cout * N
                          + Cin * 9 + Cout * Cin + Cout)

    out_flat = pl.pallas_call(
        kernel,
        out_shape=jax.ShapeDtypeStruct((B, Cout, N), jnp.float32),
        grid_spec=pltpu.PrefetchScalarGridSpec(
            num_scalar_prefetch=0,
            grid=(B, nR),
            in_specs=[
                pl.BlockSpec(memory_space=pl.ANY),                    # x stays in HBM
                pl.BlockSpec((Cin, 9), lambda b, r: (0, 0)),          # depthwise taps
                pl.BlockSpec((Cout, Cin), lambda b, r: (0, 0)),       # pointwise weight
                pl.BlockSpec((Cout, 1), lambda b, r: (0, 0)),         # fused bias
            ],
            out_specs=pl.BlockSpec((1, Cout, TB), lambda b, r: (b, 0, r)),
            scratch_shapes=[
                pltpu.VMEM((2, Cin, 2 * PADW + TB), jnp.float32),     # padded landing buf
                pltpu.SemaphoreType.DMA((2, 3)),                      # [slot, main/top/bot]
            ],
        ),
        compiler_params=pltpu.CompilerParams(
            dimension_semantics=("parallel", "arbitrary"),
            vmem_limit_bytes=32 * 1024 * 1024),
        cost_estimate=pl.CostEstimate(flops=flops, transcendentals=0,
                                      bytes_accessed=bytes_accessed),
    )(x_flat, dw_k, pw_k, pb_k)

    # Free reshape back to NCHW.
    return out_flat.reshape(B, Cout, H, W)


def _reference(x_nchw, dw, db, pw, pb):
    """Pure-JAX reference (lax convs) matching PyTorch semantics."""
    Cin = x_nchw.shape[1]
    dn = lax.conv_dimension_numbers(x_nchw.shape, dw.shape,
                                    ("NCHW", "OIHW", "NCHW"))
    y = lax.conv_general_dilated(x_nchw, dw, window_strides=(1, 1),
                                 padding=((1, 1), (1, 1)),
                                 dimension_numbers=dn,
                                 feature_group_count=Cin)
    y = y + db.reshape(1, Cin, 1, 1)
    dn2 = lax.conv_dimension_numbers(y.shape, pw.shape,
                                     ("NCHW", "OIHW", "NCHW"))
    z = lax.conv_general_dilated(y, pw, window_strides=(1, 1),
                                 padding="VALID", dimension_numbers=dn2)
    return z + pb.reshape(1, -1, 1, 1)


if __name__ == "__main__":
    # Small but representative: 4 row-tiles per image (exercises top border,
    # interior halos, bottom border, and the cross-step prefetch) and 2 compute
    # chunks per tile.
    B, Cin, Cout, H, W = 2, 4, 8, 64, 16

    key = jax.random.PRNGKey(0)
    kx, k1, k2, k3, k4 = jax.random.split(key, 5)

    x = jax.random.normal(kx, (B, Cin, H, W), dtype=jnp.float32)
    depth_w = jax.random.normal(k1, (Cin, 1, 3, 3), dtype=jnp.float32) * 0.1
    depth_b = jax.random.normal(k2, (Cin,), dtype=jnp.float32) * 0.1
    point_w = jax.random.normal(k3, (Cout, Cin, 1, 1), dtype=jnp.float32) * 0.1
    point_b = jax.random.normal(k4, (Cout,), dtype=jnp.float32) * 0.1

    out = csdn_tem(x, depth_w, depth_b, point_w, point_b,
                   tile_rows=16, chunk_rows=8)
    out = jax.block_until_ready(out)

    ref = _reference(x, depth_w, depth_b, point_w, point_b)
    assert out.shape == (B, Cout, H, W)
    assert jnp.allclose(out, ref, atol=1e-4, rtol=1e-4), \
        float(jnp.max(jnp.abs(out - ref)))

    print("KERNEL_OK")
</pallas_src>

<mosaic_0001>
module attributes {stable_mosaic.version = 11 : i64} {
  func.func @_csdn_kernel(%arg0: i32, %arg1: i32, %arg2: memref<2x4x1024xf32, #tpu.memory_space<any>>, %arg3: memref<4x9xf32, #tpu.memory_space<vmem>>, %arg4: memref<8x4xf32, #tpu.memory_space<vmem>>, %arg5: memref<8x1xf32, #tpu.memory_space<vmem>>, %arg6: memref<1x8x256xf32, #tpu.memory_space<vmem>>, %arg7: memref<2x4x512xf32, #tpu.memory_space<vmem>>, %arg8: memref<2x3x!tpu.dma_semaphore, #tpu.memory_space<semaphore_mem>>) attributes {dimension_semantics = [#tpu.dimension_semantics<parallel>, #tpu.dimension_semantics<arbitrary>], iteration_bounds = array<i64: 2, 4>, scalar_prefetch = 0 : i64, scratch_operands = 2 : i64, tpu.core_type = #tpu.core_type<tc>, window_params = [{}, {pipeline_mode = #tpu.pipeline_mode<synchronous>, transform_indices = @transform_1, window_bounds = array<i64: 4, 9>}, {pipeline_mode = #tpu.pipeline_mode<synchronous>, transform_indices = @transform_2, window_bounds = array<i64: 8, 4>}, {pipeline_mode = #tpu.pipeline_mode<synchronous>, transform_indices = @transform_3, window_bounds = array<i64: 8, 1>}, {transform_indices = @transform_4, window_bounds = array<i64: 1, 8, 256>}]} {
    %c2_i32 = arith.constant 2 : i32
    %c0_i32 = arith.constant 0 : i32
    %0 = arith.cmpi eq, %c2_i32, %c0_i32 : i32
    %c1_i32 = arith.constant 1 : i32
    %1 = arith.select %0, %c1_i32, %c2_i32 : i32
    %2 = arith.remsi %arg1, %1 : i32
    %c0_i32_0 = arith.constant 0 : i32
    %3 = arith.cmpi ne, %2, %c0_i32_0 : i32
    %c0_i32_1 = arith.constant 0 : i32
    %4 = arith.cmpi slt, %2, %c0_i32_1 : i32
    %c0_i32_2 = arith.constant 0 : i32
    %5 = arith.cmpi slt, %1, %c0_i32_2 : i32
    %6 = arith.xori %4, %5 : i1
    %7 = arith.andi %6, %3 : i1
    %8 = arith.addi %2, %1 : i32
    %9 = arith.select %7, %8, %2 : i32
    %c1_i32_3 = arith.constant 1 : i32
    %10 = arith.subi %c1_i32_3, %9 : i32
    %c0_i32_4 = arith.constant 0 : i32
    %11 = arith.cmpi eq, %arg1, %c0_i32_4 : i32
    %12 = arith.extui %11 : i1 to i32
    %c0_i32_5 = arith.constant 0 : i32
    %13 = arith.cmpi ne, %12, %c0_i32_5 : i32
    scf.if %13 {
      %c0_i32_63 = arith.constant 0 : i32
      %c0_i32_64 = arith.constant 0 : i32
      %c0_i32_65 = arith.constant 0 : i32
      %c0_i32_66 = arith.constant 0 : i32
      %c0_i32_67 = arith.constant 0 : i32
      %178 = tpu.memref_slice %arg2[%arg0, %c0_i32_66, %c0_i32_67] : memref<2x4x1024xf32, #tpu.memory_space<any>> -> memref<1x4x256xf32, #tpu.memory_space<any>>
      %179 = tpu.memref_squeeze %178 : memref<1x4x256xf32, #tpu.memory_space<any>> -> memref<4x256xf32, #tpu.memory_space<any>>
      %c0_i32_68 = arith.constant 0 : i32
      %c128_i32_69 = arith.constant 128 : i32
      %180 = tpu.memref_slice %arg7[%c0_i32_63, %c0_i32_68, %c128_i32_69] : memref<2x4x512xf32, #tpu.memory_space<vmem>> -> memref<1x4x256xf32, #tpu.memory_space<vmem>>
      %181 = tpu.memref_squeeze %180 : memref<1x4x256xf32, #tpu.memory_space<vmem>> -> memref<4x256xf32, #tpu.memory_space<vmem>>
      %182 = tpu.memref_slice %arg8[%c0_i32_64, %c0_i32_65] : memref<2x3x!tpu.dma_semaphore, #tpu.memory_space<semaphore_mem>> -> memref<1x1x!tpu.dma_semaphore, #tpu.memory_space<semaphore_mem>>
      %183 = tpu.memref_squeeze %182 : memref<1x1x!tpu.dma_semaphore, #tpu.memory_space<semaphore_mem>> -> memref<!tpu.dma_semaphore, #tpu.memory_space<semaphore_mem>>
      tpu.enqueue_dma source(%179 : memref<4x256xf32, #tpu.memory_space<any>>) target(%181 : memref<4x256xf32, #tpu.memory_space<vmem>>) target_semaphore(%183 : memref<!tpu.dma_semaphore, #tpu.memory_space<semaphore_mem>>)
      %cst_70 = arith.constant 0.000000e+00 : f32
      %184 = vector.broadcast %cst_70 : f32 to vector<4x16xf32>
      %c0_71 = arith.constant 0 : index
      %c0_72 = arith.constant 0 : index
      %c112_73 = arith.constant 112 : index
      %185 = vector.load %arg7[%c0_71, %c0_72, %c112_73] : memref<2x4x512xf32, #tpu.memory_space<vmem>>, vector<1x4x16xf32>
      %186 = vector.shape_cast %185 : vector<1x4x16xf32> to vector<4x16xf32>
      %187 = vector.shape_cast %184 : vector<4x16xf32> to vector<1x4x16xf32>
      tpu.vector_store %arg7[%c0_71, %c0_72, %c112_73], %187 {strides = array<i32>} : memref<2x4x512xf32, #tpu.memory_space<vmem>>, vector<1x4x16xf32>,
      %c0_i32_74 = arith.constant 0 : i32
      %c0_i32_75 = arith.constant 0 : i32
      %c2_i32_76 = arith.constant 2 : i32
      %c0_i32_77 = arith.constant 0 : i32
      %c256_i32 = arith.constant 256 : i32
      %188 = tpu.memref_slice %arg2[%arg0, %c0_i32_77, %c256_i32] : memref<2x4x1024xf32, #tpu.memory_space<any>> -> memref<1x4x128xf32, #tpu.memory_space<any>>
      %189 = tpu.memref_squeeze %188 : memref<1x4x128xf32, #tpu.memory_space<any>> -> memref<4x128xf32, #tpu.memory_space<any>>
      %c0_i32_78 = arith.constant 0 : i32
      %c384_i32 = arith.constant 384 : i32
      %190 = tpu.memref_slice %arg7[%c0_i32_74, %c0_i32_78, %c384_i32] : memref<2x4x512xf32, #tpu.memory_space<vmem>> -> memref<1x4x128xf32, #tpu.memory_space<vmem>>
      %191 = tpu.memref_squeeze %190 : memref<1x4x128xf32, #tpu.memory_space<vmem>> -> memref<4x128xf32, #tpu.memory_space<vmem>>
      %192 = tpu.memref_slice %arg8[%c0_i32_75, %c2_i32_76] : memref<2x3x!tpu.dma_semaphore, #tpu.memory_space<semaphore_mem>> -> memref<1x1x!tpu.dma_semaphore, #tpu.memory_space<semaphore_mem>>
      %193 = tpu.memref_squeeze %192 : memref<1x1x!tpu.dma_semaphore, #tpu.memory_space<semaphore_mem>> -> memref<!tpu.dma_semaphore, #tpu.memory_space<semaphore_mem>>
      tpu.enqueue_dma source(%189 : memref<4x128xf32, #tpu.memory_space<any>>) target(%191 : memref<4x128xf32, #tpu.memory_space<vmem>>) target_semaphore(%193 : memref<!tpu.dma_semaphore, #tpu.memory_space<semaphore_mem>>)
    } else {
    }
    %c1_i32_6 = arith.constant 1 : i32
    %14 = arith.addi %arg1, %c1_i32_6 : i32
    %c4_i32 = arith.constant 4 : i32
    %15 = arith.cmpi slt, %14, %c4_i32 : i32
    %16 = arith.extui %15 : i1 to i32
    %c0_i32_7 = arith.constant 0 : i32
    %17 = arith.cmpi ne, %16, %c0_i32_7 : i32
    scf.if %17 {
      %c1_i32_63 = arith.constant 1 : i32
      %178 = arith.addi %arg1, %c1_i32_63 : i32
      %c256_i32 = arith.constant 256 : i32
      %179 = arith.muli %178, %c256_i32 : i32
      %c0_i32_64 = arith.constant 0 : i32
      %c0_i32_65 = arith.constant 0 : i32
      %180 = tpu.memref_slice %arg2[%arg0, %c0_i32_65, %179] : memref<2x4x1024xf32, #tpu.memory_space<any>> -> memref<1x4x256xf32, #tpu.memory_space<any>>
      %181 = tpu.memref_squeeze %180 : memref<1x4x256xf32, #tpu.memory_space<any>> -> memref<4x256xf32, #tpu.memory_space<any>>
      %c0_i32_66 = arith.constant 0 : i32
      %c128_i32_67 = arith.constant 128 : i32
      %182 = tpu.memref_slice %arg7[%10, %c0_i32_66, %c128_i32_67] : memref<2x4x512xf32, #tpu.memory_space<vmem>> -> memref<1x4x256xf32, #tpu.memory_space<vmem>>
      %183 = tpu.memref_squeeze %182 : memref<1x4x256xf32, #tpu.memory_space<vmem>> -> memref<4x256xf32, #tpu.memory_space<vmem>>
      %184 = tpu.memref_slice %arg8[%10, %c0_i32_64] : memref<2x3x!tpu.dma_semaphore, #tpu.memory_space<semaphore_mem>> -> memref<1x1x!tpu.dma_semaphore, #tpu.memory_space<semaphore_mem>>
      %185 = tpu.memref_squeeze %184 : memref<1x1x!tpu.dma_semaphore, #tpu.memory_space<semaphore_mem>> -> memref<!tpu.dma_semaphore, #tpu.memory_space<semaphore_mem>>
      tpu.enqueue_dma source(%181 : memref<4x256xf32, #tpu.memory_space<any>>) target(%183 : memref<4x256xf32, #tpu.memory_space<vmem>>) target_semaphore(%185 : memref<!tpu.dma_semaphore, #tpu.memory_space<semaphore_mem>>)
      %c1_i32_68 = arith.constant 1 : i32
      %186 = arith.addi %arg1, %c1_i32_68 : i32
      %c256_i32_69 = arith.constant 256 : i32
      %187 = arith.muli %186, %c256_i32_69 : i32
      %c128_i32_70 = arith.constant 128 : i32
      %188 = arith.subi %187, %c128_i32_70 : i32
      %c1_i32_71 = arith.constant 1 : i32
      %c0_i32_72 = arith.constant 0 : i32
      %189 = tpu.memref_slice %arg2[%arg0, %c0_i32_72, %188] : memref<2x4x1024xf32, #tpu.memory_space<any>> -> memref<1x4x128xf32, #tpu.memory_space<any>>
      %190 = tpu.memref_squeeze %189 : memref<1x4x128xf32, #tpu.memory_space<any>> -> memref<4x128xf32, #tpu.memory_space<any>>
      %c0_i32_73 = arith.constant 0 : i32
      %c0_i32_74 = arith.constant 0 : i32
      %191 = tpu.memref_slice %arg7[%10, %c0_i32_73, %c0_i32_74] : memref<2x4x512xf32, #tpu.memory_space<vmem>> -> memref<1x4x128xf32, #tpu.memory_space<vmem>>
      %192 = tpu.memref_squeeze %191 : memref<1x4x128xf32, #tpu.memory_space<vmem>> -> memref<4x128xf32, #tpu.memory_space<vmem>>
      %193 = tpu.memref_slice %arg8[%10, %c1_i32_71] : memref<2x3x!tpu.dma_semaphore, #tpu.memory_space<semaphore_mem>> -> memref<1x1x!tpu.dma_semaphore, #tpu.memory_space<semaphore_mem>>
      %194 = tpu.memref_squeeze %193 : memref<1x1x!tpu.dma_semaphore, #tpu.memory_space<semaphore_mem>> -> memref<!tpu.dma_semaphore, #tpu.memory_space<semaphore_mem>>
      tpu.enqueue_dma source(%190 : memref<4x128xf32, #tpu.memory_space<any>>) target(%192 : memref<4x128xf32, #tpu.memory_space<vmem>>) target_semaphore(%194 : memref<!tpu.dma_semaphore, #tpu.memory_space<semaphore_mem>>)
    } else {
    }
    %c1_i32_8 = arith.constant 1 : i32
    %18 = arith.addi %arg1, %c1_i32_8 : i32
    %c3_i32 = arith.constant 3 : i32
    %19 = arith.cmpi slt, %18, %c3_i32 : i32
    %20 = arith.extui %19 : i1 to i32
    %c0_i32_9 = arith.constant 0 : i32
    %21 = arith.cmpi ne, %20, %c0_i32_9 : i32
    scf.if %21 {
      %c1_i32_63 = arith.constant 1 : i32
      %178 = arith.addi %arg1, %c1_i32_63 : i32
      %c1_i32_64 = arith.constant 1 : i32
      %179 = arith.addi %178, %c1_i32_64 : i32
      %c256_i32 = arith.constant 256 : i32
      %180 = arith.muli %179, %c256_i32 : i32
      %c2_i32_65 = arith.constant 2 : i32
      %c0_i32_66 = arith.constant 0 : i32
      %181 = tpu.memref_slice %arg2[%arg0, %c0_i32_66, %180] : memref<2x4x1024xf32, #tpu.memory_space<any>> -> memref<1x4x128xf32, #tpu.memory_space<any>>
      %182 = tpu.memref_squeeze %181 : memref<1x4x128xf32, #tpu.memory_space<any>> -> memref<4x128xf32, #tpu.memory_space<any>>
      %c0_i32_67 = arith.constant 0 : i32
      %c384_i32 = arith.constant 384 : i32
      %183 = tpu.memref_slice %arg7[%10, %c0_i32_67, %c384_i32] : memref<2x4x512xf32, #tpu.memory_space<vmem>> -> memref<1x4x128xf32, #tpu.memory_space<vmem>>
      %184 = tpu.memref_squeeze %183 : memref<1x4x128xf32, #tpu.memory_space<vmem>> -> memref<4x128xf32, #tpu.memory_space<vmem>>
      %185 = tpu.memref_slice %arg8[%10, %c2_i32_65] : memref<2x3x!tpu.dma_semaphore, #tpu.memory_space<semaphore_mem>> -> memref<1x1x!tpu.dma_semaphore, #tpu.memory_space<semaphore_mem>>
      %186 = tpu.memref_squeeze %185 : memref<1x1x!tpu.dma_semaphore, #tpu.memory_space<semaphore_mem>> -> memref<!tpu.dma_semaphore, #tpu.memory_space<semaphore_mem>>
      tpu.enqueue_dma source(%182 : memref<4x128xf32, #tpu.memory_space<any>>) target(%184 : memref<4x128xf32, #tpu.memory_space<vmem>>) target_semaphore(%186 : memref<!tpu.dma_semaphore, #tpu.memory_space<semaphore_mem>>)
    } else {
    }
    %c1_i32_10 = arith.constant 1 : i32
    %22 = arith.addi %arg1, %c1_i32_10 : i32
    %c3_i32_11 = arith.constant 3 : i32
    %23 = arith.cmpi eq, %22, %c3_i32_11 : i32
    %24 = arith.extui %23 : i1 to i32
    %c0_i32_12 = arith.constant 0 : i32
    %25 = arith.cmpi ne, %24, %c0_i32_12 : i32
    scf.if %25 {
      %cst_63 = arith.constant 0.000000e+00 : f32
      %178 = vector.broadcast %cst_63 : f32 to vector<4x16xf32>
      %179 = arith.index_cast %10 : i32 to index
      %c0_64 = arith.constant 0 : index
      %c384 = arith.constant 384 : index
      %180 = vector.load %arg7[%179, %c0_64, %c384] : memref<2x4x512xf32, #tpu.memory_space<vmem>>, vector<1x4x16xf32>
      %181 = vector.shape_cast %180 : vector<1x4x16xf32> to vector<4x16xf32>
      %182 = vector.shape_cast %178 : vector<4x16xf32> to vector<1x4x16xf32>
      tpu.vector_store %arg7[%179, %c0_64, %c384], %182 {strides = array<i32>} : memref<2x4x512xf32, #tpu.memory_space<vmem>>, vector<1x4x16xf32>,
    } else {
    }
    %c0_i32_13 = arith.constant 0 : i32
    %c0_i32_14 = arith.constant 0 : i32
    %c0_i32_15 = arith.constant 0 : i32
    %c0_i32_16 = arith.constant 0 : i32
    %26 = tpu.memref_slice %arg2[%c0_i32_13, %c0_i32_15, %c0_i32_16] : memref<2x4x1024xf32, #tpu.memory_space<any>> -> memref<1x4x256xf32, #tpu.memory_space<any>>
    %27 = tpu.memref_squeeze %26 : memref<1x4x256xf32, #tpu.memory_space<any>> -> memref<4x256xf32, #tpu.memory_space<any>>
    %c0_i32_17 = arith.constant 0 : i32
    %c128_i32 = arith.constant 128 : i32
    %28 = tpu.memref_slice %arg7[%9, %c0_i32_17, %c128_i32] : memref<2x4x512xf32, #tpu.memory_space<vmem>> -> memref<1x4x256xf32, #tpu.memory_space<vmem>>
    %29 = tpu.memref_squeeze %28 : memref<1x4x256xf32, #tpu.memory_space<vmem>> -> memref<4x256xf32, #tpu.memory_space<vmem>>
    %30 = tpu.memref_slice %arg8[%9, %c0_i32_14] : memref<2x3x!tpu.dma_semaphore, #tpu.memory_space<semaphore_mem>> -> memref<1x1x!tpu.dma_semaphore, #tpu.memory_space<semaphore_mem>>
    %31 = tpu.memref_squeeze %30 : memref<1x1x!tpu.dma_semaphore, #tpu.memory_space<semaphore_mem>> -> memref<!tpu.dma_semaphore, #tpu.memory_space<semaphore_mem>>
    tpu.wait_dma2 semaphore(%31 : memref<!tpu.dma_semaphore, #tpu.memory_space<semaphore_mem>>) src(%27 : memref<4x256xf32, #tpu.memory_space<any>>) dst(%29 : memref<4x256xf32, #tpu.memory_space<vmem>>)
    %c0_i32_18 = arith.constant 0 : i32
    %32 = arith.cmpi sgt, %arg1, %c0_i32_18 : i32
    %33 = arith.extui %32 : i1 to i32
    %c0_i32_19 = arith.constant 0 : i32
    %34 = arith.cmpi ne, %33, %c0_i32_19 : i32
    scf.if %34 {
      %c0_i32_63 = arith.constant 0 : i32
      %c1_i32_64 = arith.constant 1 : i32
      %c0_i32_65 = arith.constant 0 : i32
      %c0_i32_66 = arith.constant 0 : i32
      %178 = tpu.memref_slice %arg2[%c0_i32_63, %c0_i32_65, %c0_i32_66] : memref<2x4x1024xf32, #tpu.memory_space<any>> -> memref<1x4x128xf32, #tpu.memory_space<any>>
      %179 = tpu.memref_squeeze %178 : memref<1x4x128xf32, #tpu.memory_space<any>> -> memref<4x128xf32, #tpu.memory_space<any>>
      %c0_i32_67 = arith.constant 0 : i32
      %c0_i32_68 = arith.constant 0 : i32
      %180 = tpu.memref_slice %arg7[%9, %c0_i32_67, %c0_i32_68] : memref<2x4x512xf32, #tpu.memory_space<vmem>> -> memref<1x4x128xf32, #tpu.memory_space<vmem>>
      %181 = tpu.memref_squeeze %180 : memref<1x4x128xf32, #tpu.memory_space<vmem>> -> memref<4x128xf32, #tpu.memory_space<vmem>>
      %182 = tpu.memref_slice %arg8[%9, %c1_i32_64] : memref<2x3x!tpu.dma_semaphore, #tpu.memory_space<semaphore_mem>> -> memref<1x1x!tpu.dma_semaphore, #tpu.memory_space<semaphore_mem>>
      %183 = tpu.memref_squeeze %182 : memref<1x1x!tpu.dma_semaphore, #tpu.memory_space<semaphore_mem>> -> memref<!tpu.dma_semaphore, #tpu.memory_space<semaphore_mem>>
      tpu.wait_dma2 semaphore(%183 : memref<!tpu.dma_semaphore, #tpu.memory_space<semaphore_mem>>) src(%179 : memref<4x128xf32, #tpu.memory_space<any>>) dst(%181 : memref<4x128xf32, #tpu.memory_space<vmem>>)
    } else {
    }
    %c3_i32_20 = arith.constant 3 : i32
    %35 = arith.cmpi slt, %arg1, %c3_i32_20 : i32
    %36 = arith.extui %35 : i1 to i32
    %c0_i32_21 = arith.constant 0 : i32
    %37 = arith.cmpi ne, %36, %c0_i32_21 : i32
    scf.if %37 {
      %c0_i32_63 = arith.constant 0 : i32
      %c2_i32_64 = arith.constant 2 : i32
      %c0_i32_65 = arith.constant 0 : i32
      %c0_i32_66 = arith.constant 0 : i32
      %178 = tpu.memref_slice %arg2[%c0_i32_63, %c0_i32_65, %c0_i32_66] : memref<2x4x1024xf32, #tpu.memory_space<any>> -> memref<1x4x128xf32, #tpu.memory_space<any>>
      %179 = tpu.memref_squeeze %178 : memref<1x4x128xf32, #tpu.memory_space<any>> -> memref<4x128xf32, #tpu.memory_space<any>>
      %c0_i32_67 = arith.constant 0 : i32
      %c384_i32 = arith.constant 384 : i32
      %180 = tpu.memref_slice %arg7[%9, %c0_i32_67, %c384_i32] : memref<2x4x512xf32, #tpu.memory_space<vmem>> -> memref<1x4x128xf32, #tpu.memory_space<vmem>>
      %181 = tpu.memref_squeeze %180 : memref<1x4x128xf32, #tpu.memory_space<vmem>> -> memref<4x128xf32, #tpu.memory_space<vmem>>
      %182 = tpu.memref_slice %arg8[%9, %c2_i32_64] : memref<2x3x!tpu.dma_semaphore, #tpu.memory_space<semaphore_mem>> -> memref<1x1x!tpu.dma_semaphore, #tpu.memory_space<semaphore_mem>>
      %183 = tpu.memref_squeeze %182 : memref<1x1x!tpu.dma_semaphore, #tpu.memory_space<semaphore_mem>> -> memref<!tpu.dma_semaphore, #tpu.memory_space<semaphore_mem>>
      tpu.wait_dma2 semaphore(%183 : memref<!tpu.dma_semaphore, #tpu.memory_space<semaphore_mem>>) src(%179 : memref<4x128xf32, #tpu.memory_space<any>>) dst(%181 : memref<4x128xf32, #tpu.memory_space<vmem>>)
    } else {
    }
    %c0 = arith.constant 0 : index
    %c0_22 = arith.constant 0 : index
    %38 = vector.load %arg3[%c0, %c0_22] : memref<4x9xf32, #tpu.memory_space<vmem>>, vector<4x9xf32>
    %c0_23 = arith.constant 0 : index
    %c0_24 = arith.constant 0 : index
    %39 = vector.load %arg4[%c0_23, %c0_24] : memref<8x4xf32, #tpu.memory_space<vmem>>, vector<8x4xf32>
    %c0_25 = arith.constant 0 : index
    %c0_26 = arith.constant 0 : index
    %40 = vector.load %arg5[%c0_25, %c0_26] : memref<8x1xf32, #tpu.memory_space<vmem>>, vector<8x1xf32>
    %41 = vector.extract_strided_slice %38 {offsets = [0, 0], sizes = [4, 1], strides = [1, 1]} : vector<4x9xf32> to vector<4x1xf32>
    %42 = vector.extract_strided_slice %38 {offsets = [0, 1], sizes = [4, 1], strides = [1, 1]} : vector<4x9xf32> to vector<4x1xf32>
    %43 = vector.extract_strided_slice %38 {offsets = [0, 2], sizes = [4, 1], strides = [1, 1]} : vector<4x9xf32> to vector<4x1xf32>
    %44 = vector.extract_strided_slice %38 {offsets = [0, 3], sizes = [4, 1], strides = [1, 1]} : vector<4x9xf32> to vector<4x1xf32>
    %45 = vector.extract_strided_slice %38 {offsets = [0, 4], sizes = [4, 1], strides = [1, 1]} : vector<4x9xf32> to vector<4x1xf32>
    %46 = vector.extract_strided_slice %38 {offsets = [0, 5], sizes = [4, 1], strides = [1, 1]} : vector<4x9xf32> to vector<4x1xf32>
    %47 = vector.extract_strided_slice %38 {offsets = [0, 6], sizes = [4, 1], strides = [1, 1]} : vector<4x9xf32> to vector<4x1xf32>
    %48 = vector.extract_strided_slice %38 {offsets = [0, 7], sizes = [4, 1], strides = [1, 1]} : vector<4x9xf32> to vector<4x1xf32>
    %49 = vector.extract_strided_slice %38 {offsets = [0, 8], sizes = [4, 1], strides = [1, 1]} : vector<4x9xf32> to vector<4x1xf32>
    %50 = tpu.iota {dimensions = array<i32: 1>} : vector<1x128xi32>
    %c16_i32 = arith.constant 16 : i32
    %c0_i32_27 = arith.constant 0 : i32
    %51 = arith.cmpi eq, %c16_i32, %c0_i32_27 : i32
    %c1_i32_28 = arith.constant 1 : i32
    %52 = arith.select %51, %c1_i32_28, %c16_i32 : i32
    %53 = vector.broadcast %52 : i32 to vector<1x128xi32>
    %54 = arith.remsi %50, %53 : vector<1x128xi32>
    %c0_i32_29 = arith.constant 0 : i32
    %55 = vector.broadcast %c0_i32_29 : i32 to vector<1x128xi32>
    %56 = arith.cmpi ne, %54, %55 : vector<1x128xi32>
    %c0_i32_30 = arith.constant 0 : i32
    %57 = vector.broadcast %c0_i32_30 : i32 to vector<1x128xi32>
    %58 = arith.cmpi slt, %54, %57 : vector<1x128xi32>
    %c0_i32_31 = arith.constant 0 : i32
    %59 = arith.cmpi slt, %52, %c0_i32_31 : i32
    %60 = vector.broadcast %59 : i1 to vector<1x128xi1>
    %61 = vector.broadcast %60 : vector<1x128xi1> to vector<1x128xi1>
    %62 = arith.xori %58, %61 : vector<1x128xi1>
    %63 = arith.andi %62, %56 : vector<1x128xi1>
    %64 = vector.broadcast %52 : i32 to vector<1x128xi32>
    %65 = arith.addi %54, %64 : vector<1x128xi32>
    %66 = arith.select %63, %65, %54 : vector<1x128xi1>, vector<1x128xi32>
    %c1_i32_32 = arith.constant 1 : i32
    %67 = vector.broadcast %c1_i32_32 : i32 to vector<1x128xi32>
    %68 = arith.cmpi sge, %66, %67 : vector<1x128xi32>
    %c14_i32 = arith.constant 14 : i32
    %69 = vector.broadcast %c14_i32 : i32 to vector<1x128xi32>
    %70 = arith.cmpi sle, %66, %69 : vector<1x128xi32>
    %cst = arith.constant 0.000000e+00 : f32
    %71 = vector.broadcast %cst : f32 to vector<4x1xf32>
    %c0_i32_33 = arith.constant 0 : i32
    %c0_i32_34 = arith.constant 0 : i32
    %72 = tpu.memref_slice %arg7[%9, %c0_i32_33, %c0_i32_34] : memref<2x4x512xf32, #tpu.memory_space<vmem>> -> memref<1x4x512xf32, #tpu.memory_space<vmem>>
    %73 = tpu.memref_squeeze %72 : memref<1x4x512xf32, #tpu.memory_space<vmem>> -> memref<4x512xf32, #tpu.memory_space<vmem>>
    %c0_35 = arith.constant 0 : index
    %c112 = arith.constant 112 : index
    %74 = vector.load %73[%c0_35, %c112] : memref<4x512xf32, #tpu.memory_space<vmem>>, vector<4x128xf32>
    %c0_i32_36 = arith.constant 0 : i32
    %c0_i32_37 = arith.constant 0 : i32
    %75 = tpu.memref_slice %arg7[%9, %c0_i32_36, %c0_i32_37] : memref<2x4x512xf32, #tpu.memory_space<vmem>> -> memref<1x4x512xf32, #tpu.memory_space<vmem>>
    %76 = tpu.memref_squeeze %75 : memref<1x4x512xf32, #tpu.memory_space<vmem>> -> memref<4x512xf32, #tpu.memory_space<vmem>>
    %c0_38 = arith.constant 0 : index
    %c128 = arith.constant 128 : index
    %77 = vector.load %76[%c0_38, %c128] : memref<4x512xf32, #tpu.memory_space<vmem>>, vector<4x128xf32>
    %c0_i32_39 = arith.constant 0 : i32
    %c0_i32_40 = arith.constant 0 : i32
    %78 = tpu.memref_slice %arg7[%9, %c0_i32_39, %c0_i32_40] : memref<2x4x512xf32, #tpu.memory_space<vmem>> -> memref<1x4x512xf32, #tpu.memory_space<vmem>>
    %79 = tpu.memref_squeeze %78 : memref<1x4x512xf32, #tpu.memory_space<vmem>> -> memref<4x512xf32, #tpu.memory_space<vmem>>
    %c0_41 = arith.constant 0 : index
    %c144 = arith.constant 144 : index
    %80 = vector.load %79[%c0_41, %c144] : memref<4x512xf32, #tpu.memory_space<vmem>>, vector<4x128xf32>
    %81 = vector.broadcast %41 : vector<4x1xf32> to vector<4x128xf32>
    %82 = arith.mulf %74, %81 : vector<4x128xf32>
    %83 = vector.broadcast %44 : vector<4x1xf32> to vector<4x128xf32>
    %84 = arith.mulf %77, %83 : vector<4x128xf32>
    %85 = arith.addf %82, %84 : vector<4x128xf32>
    %86 = vector.broadcast %47 : vector<4x1xf32> to vector<4x128xf32>
    %87 = arith.mulf %80, %86 : vector<4x128xf32>
    %88 = arith.addf %85, %87 : vector<4x128xf32>
    %89 = vector.broadcast %42 : vector<4x1xf32> to vector<4x128xf32>
    %90 = arith.mulf %74, %89 : vector<4x128xf32>
    %91 = vector.broadcast %45 : vector<4x1xf32> to vector<4x128xf32>
    %92 = arith.mulf %77, %91 : vector<4x128xf32>
    %93 = arith.addf %90, %92 : vector<4x128xf32>
    %94 = vector.broadcast %48 : vector<4x1xf32> to vector<4x128xf32>
    %95 = arith.mulf %80, %94 : vector<4x128xf32>
    %96 = arith.addf %93, %95 : vector<4x128xf32>
    %97 = vector.broadcast %43 : vector<4x1xf32> to vector<4x128xf32>
    %98 = arith.mulf %74, %97 : vector<4x128xf32>
    %99 = vector.broadcast %46 : vector<4x1xf32> to vector<4x128xf32>
    %100 = arith.mulf %77, %99 : vector<4x128xf32>
    %101 = arith.addf %98, %100 : vector<4x128xf32>
    %102 = vector.broadcast %49 : vector<4x1xf32> to vector<4x128xf32>
    %103 = arith.mulf %80, %102 : vector<4x128xf32>
    %104 = arith.addf %101, %103 : vector<4x128xf32>
    %105 = vector.extract_strided_slice %88 {offsets = [0, 0], sizes = [4, 127], strides = [1, 1]} : vector<4x128xf32> to vector<4x127xf32>
    %106 = tpu.concatenate %71, %105 in 1 : vector<4x1xf32>, vector<4x127xf32> -> vector<4x128xf32>
    %107 = vector.extract_strided_slice %104 {offsets = [0, 1], sizes = [4, 127], strides = [1, 1]} : vector<4x128xf32> to vector<4x127xf32>
    %108 = tpu.concatenate %107, %71 in 1 : vector<4x127xf32>, vector<4x1xf32> -> vector<4x128xf32>
    %cst_42 = arith.constant 0.000000e+00 : f32
    %109 = vector.shape_cast %68 : vector<1x128xi1> to vector<1x128xi1>
    %110 = vector.broadcast %109 : vector<1x128xi1> to vector<4x128xi1>
    %111 = vector.broadcast %cst_42 : f32 to vector<4x128xf32>
    %112 = arith.select %110, %106, %111 : vector<4x128xi1>, vector<4x128xf32>
    %113 = arith.addf %96, %112 : vector<4x128xf32>
    %cst_43 = arith.constant 0.000000e+00 : f32
    %114 = vector.shape_cast %70 : vector<1x128xi1> to vector<1x128xi1>
    %115 = vector.broadcast %114 : vector<1x128xi1> to vector<4x128xi1>
    %116 = vector.broadcast %cst_43 : f32 to vector<4x128xf32>
    %117 = arith.select %115, %108, %116 : vector<4x128xi1>, vector<4x128xf32>
    %118 = arith.addf %113, %117 : vector<4x128xf32>
    %cst_44 = arith.constant dense<0.000000e+00> : vector<8x128xf32>
    %119 = tpu.matmul %39, %118, %cst_44 {dimension_numbers = #tpu.dot_dimension_numbers<[1], [0], [0], [1], [0, 0, 1, 1], [], []>} : vector<8x4xf32>, vector<4x128xf32>, vector<8x128xf32> -> vector<8x128xf32>
    %120 = vector.broadcast %40 : vector<8x1xf32> to vector<8x128xf32>
    %121 = arith.addf %119, %120 : vector<8x128xf32>
    %c0_45 = arith.constant 0 : index
    %c0_46 = arith.constant 0 : index
    %c0_47 = arith.constant 0 : index
    %122 = vector.load %arg6[%c0_45, %c0_46, %c0_47] : memref<1x8x256xf32, #tpu.memory_space<vmem>>, vector<1x8x128xf32>
    %123 = vector.shape_cast %122 : vector<1x8x128xf32> to vector<8x128xf32>
    %124 = vector.shape_cast %121 : vector<8x128xf32> to vector<1x8x128xf32>
    tpu.vector_store %arg6[%c0_45, %c0_46, %c0_47], %124 {strides = array<i32>} : memref<1x8x256xf32, #tpu.memory_space<vmem>>, vector<1x8x128xf32>,
    %c0_i32_48 = arith.constant 0 : i32
    %c0_i32_49 = arith.constant 0 : i32
    %125 = tpu.memref_slice %arg7[%9, %c0_i32_48, %c0_i32_49] : memref<2x4x512xf32, #tpu.memory_space<vmem>> -> memref<1x4x512xf32, #tpu.memory_space<vmem>>
    %126 = tpu.memref_squeeze %125 : memref<1x4x512xf32, #tpu.memory_space<vmem>> -> memref<4x512xf32, #tpu.memory_space<vmem>>
    %c0_50 = arith.constant 0 : index
    %c240 = arith.constant 240 : index
    %127 = vector.load %126[%c0_50, %c240] : memref<4x512xf32, #tpu.memory_space<vmem>>, vector<4x128xf32>
    %c0_i32_51 = arith.constant 0 : i32
    %c0_i32_52 = arith.constant 0 : i32
    %128 = tpu.memref_slice %arg7[%9, %c0_i32_51, %c0_i32_52] : memref<2x4x512xf32, #tpu.memory_space<vmem>> -> memref<1x4x512xf32, #tpu.memory_space<vmem>>
    %129 = tpu.memref_squeeze %128 : memref<1x4x512xf32, #tpu.memory_space<vmem>> -> memref<4x512xf32, #tpu.memory_space<vmem>>
    %c0_53 = arith.constant 0 : index
    %c256 = arith.constant 256 : index
    %130 = vector.load %129[%c0_53, %c256] : memref<4x512xf32, #tpu.memory_space<vmem>>, vector<4x128xf32>
    %c0_i32_54 = arith.constant 0 : i32
    %c0_i32_55 = arith.constant 0 : i32
    %131 = tpu.memref_slice %arg7[%9, %c0_i32_54, %c0_i32_55] : memref<2x4x512xf32, #tpu.memory_space<vmem>> -> memref<1x4x512xf32, #tpu.memory_space<vmem>>
    %132 = tpu.memref_squeeze %131 : memref<1x4x512xf32, #tpu.memory_space<vmem>> -> memref<4x512xf32, #tpu.memory_space<vmem>>
    %c0_56 = arith.constant 0 : index
    %c272 = arith.constant 272 : index
    %133 = vector.load %132[%c0_56, %c272] : memref<4x512xf32, #tpu.memory_space<vmem>>, vector<4x128xf32>
    %134 = vector.broadcast %41 : vector<4x1xf32> to vector<4x128xf32>
    %135 = arith.mulf %127, %134 : vector<4x128xf32>
    %136 = vector.broadcast %44 : vector<4x1xf32> to vector<4x128xf32>
    %137 = arith.mulf %130, %136 : vector<4x128xf32>
    %138 = arith.addf %135, %137 : vector<4x128xf32>
    %139 = vector.broadcast %47 : vector<4x1xf32> to vector<4x128xf32>
    %140 = arith.mulf %133, %139 : vector<4x128xf32>
    %141 = arith.addf %138, %140 : vector<4x128xf32>
    %142 = vector.broadcast %42 : vector<4x1xf32> to vector<4x128xf32>
    %143 = arith.mulf %127, %142 : vector<4x128xf32>
    %144 = vector.broadcast %45 : vector<4x1xf32> to vector<4x128xf32>
    %145 = arith.mulf %130, %144 : vector<4x128xf32>
    %146 = arith.addf %143, %145 : vector<4x128xf32>
    %147 = vector.broadcast %48 : vector<4x1xf32> to vector<4x128xf32>
    %148 = arith.mulf %133, %147 : vector<4x128xf32>
    %149 = arith.addf %146, %148 : vector<4x128xf32>
    %150 = vector.broadcast %43 : vector<4x1xf32> to vector<4x128xf32>
    %151 = arith.mulf %127, %150 : vector<4x128xf32>
    %152 = vector.broadcast %46 : vector<4x1xf32> to vector<4x128xf32>
    %153 = arith.mulf %130, %152 : vector<4x128xf32>
    %154 = arith.addf %151, %153 : vector<4x128xf32>
    %155 = vector.broadcast %49 : vector<4x1xf32> to vector<4x128xf32>
    %156 = arith.mulf %133, %155 : vector<4x128xf32>
    %157 = arith.addf %154, %156 : vector<4x128xf32>
    %158 = vector.extract_strided_slice %141 {offsets = [0, 0], sizes = [4, 127], strides = [1, 1]} : vector<4x128xf32> to vector<4x127xf32>
    %159 = tpu.concatenate %71, %158 in 1 : vector<4x1xf32>, vector<4x127xf32> -> vector<4x128xf32>
    %160 = vector.extract_strided_slice %157 {offsets = [0, 1], sizes = [4, 127], strides = [1, 1]} : vector<4x128xf32> to vector<4x127xf32>
    %161 = tpu.concatenate %160, %71 in 1 : vector<4x127xf32>, vector<4x1xf32> -> vector<4x128xf32>
    %cst_57 = arith.constant 0.000000e+00 : f32
    %162 = vector.shape_cast %68 : vector<1x128xi1> to vector<1x128xi1>
    %163 = vector.broadcast %162 : vector<1x128xi1> to vector<4x128xi1>
    %164 = vector.broadcast %cst_57 : f32 to vector<4x128xf32>
    %165 = arith.select %163, %159, %164 : vector<4x128xi1>, vector<4x128xf32>
    %166 = arith.addf %149, %165 : vector<4x128xf32>
    %cst_58 = arith.constant 0.000000e+00 : f32
    %167 = vector.shape_cast %70 : vector<1x128xi1> to vector<1x128xi1>
    %168 = vector.broadcast %167 : vector<1x128xi1> to vector<4x128xi1>
    %169 = vector.broadcast %cst_58 : f32 to vector<4x128xf32>
    %170 = arith.select %168, %161, %169 : vector<4x128xi1>, vector<4x128xf32>
    %171 = arith.addf %166, %170 : vector<4x128xf32>
    %cst_59 = arith.constant dense<0.000000e+00> : vector<8x128xf32>
    %172 = tpu.matmul %39, %171, %cst_59 {dimension_numbers = #tpu.dot_dimension_numbers<[1], [0], [0], [1], [0, 0, 1, 1], [], []>} : vector<8x4xf32>, vector<4x128xf32>, vector<8x128xf32> -> vector<8x128xf32>
    %173 = vector.broadcast %40 : vector<8x1xf32> to vector<8x128xf32>
    %174 = arith.addf %172, %173 : vector<8x128xf32>
    %c0_60 = arith.constant 0 : index
    %c0_61 = arith.constant 0 : index
    %c128_62 = arith.constant 128 : index
    %175 = vector.load %arg6[%c0_60, %c0_61, %c128_62] : memref<1x8x256xf32, #tpu.memory_space<vmem>>, vector<1x8x128xf32>
    %176 = vector.shape_cast %175 : vector<1x8x128xf32> to vector<8x128xf32>
    %177 = vector.shape_cast %174 : vector<8x128xf32> to vector<1x8x128xf32>
    tpu.vector_store %arg6[%c0_60, %c0_61, %c128_62], %177 {strides = array<i32>} : memref<1x8x256xf32, #tpu.memory_space<vmem>>, vector<1x8x128xf32>,
    return
  }
  func.func @transform_1(%arg0: i32, %arg1: i32) -> (i32, i32) {
    %c0_i32 = arith.constant 0 : i32
    %c0_i32_0 = arith.constant 0 : i32
    %c0_i32_1 = arith.constant 0 : i32
    return %c0_i32, %c0_i32_0 : i32, i32
  }
  func.func @transform_2(%arg0: i32, %arg1: i32) -> (i32, i32) {
    %c0_i32 = arith.constant 0 : i32
    %c0_i32_0 = arith.constant 0 : i32
    %c0_i32_1 = arith.constant 0 : i32
    return %c0_i32, %c0_i32_0 : i32, i32
  }
  func.func @transform_3(%arg0: i32, %arg1: i32) -> (i32, i32) {
    %c0_i32 = arith.constant 0 : i32
    %c0_i32_0 = arith.constant 0 : i32
    %c0_i32_1 = arith.constant 0 : i32
    return %c0_i32, %c0_i32_0 : i32, i32
  }
  func.func @transform_4(%arg0: i32, %arg1: i32) -> (i32, i32, i32) {
    %c0_i32 = arith.constant 0 : i32
    %c0_i32_0 = arith.constant 0 : i32
    return %arg0, %c0_i32, %arg1 : i32, i32, i32
  }
}

</mosaic_0001>

<bundles_post_ra>
// kernel: tpu_custom_call.1
= control target key start
LH: loop header
LB: loop body
LE: loop exit
PB: predicated region body
PF: predicated region fallthrough
CT: control target
= control target key end

     0   :  { %s1757_s0 = inlined_call_operand.hbm [shape: f32[2,4,1024], index: 0, kind: input, shape index: {}]   ;;  %s1758_s1 = inlined_call_operand.vmem [shape: f32[4,9], index: 1, kind: input, shape index: {}]   ;;  %s1759_s2 = inlined_call_operand.vmem [shape: f32[8,4], index: 2, kind: input, shape index: {}]   ;;  %s1760_s3 = inlined_call_operand.vmem [shape: f32[8,1], index: 3, kind: input, shape index: {}]   ;;  %s1761_s4 = inlined_call_operand.hbm [shape: f32[2,8,1024], index: 4, kind: output, shape index: {}]  }
   0x1   :  { %1775 = sst [smem:[#allocation31_spill]] %s1761_s4 }
   0x2   :  { %9 = vsyncpa [#allocation5], 0 }
   0x3   :  { %11 = vsyncpa [#allocation5 + $0x1], 0  ;;  %s1389_s15 = smov 0   ;;  %s1391_s16 = smov 0  }
   0x4   :  { %s1393_s17 = smov 0   ;;  %s1395_s18 = smov 0  }
   0x5   :  { %s1397_s19 = smov 0   ;;  %s1399_s20 = smov 0  }
   0x6   :  { %s1401_s21 = smov 0   ;;  %s1403_s22 = smov 0  }
   0x7 LB: > { %1776 = sst [smem:[#allocation22_spill]] %s1311_s15  ;;  %s911_s23 = sadd.s32 4294967295, %s1339_s22   ;;  %s1339_s22 = sphi %s1403_s22, %s17_s22   ;;  %s1335_s21 = sphi %s1401_s21, %s1803_s21   ;;  %s1331_s20 = sphi %s1399_s20, %s1806_s20   ;;  %s1327_s19 = sphi %s1397_s19, %s1801_s19   ;;  %s1323_s18 = sphi %s1395_s18, %s1800_s18   ;;  %s1319_s17 = sphi %s1393_s17, %s1799_s17   ;;  %s1315_s16 = sphi %s1391_s16, %s1805_s16   ;;  %s1311_s15 = sphi %s1389_s15, %s1804_s15  }
   0x8   : > { %1777 = sst [smem:[#allocation23_spill]] %s1319_s17  ;;  %s912_s24 = sadd.s32 4294967294, %s1339_s22  }
   0x9   : > { %1778 = sst [smem:[#allocation24_spill]] %s1331_s20  ;;  %s26_s25 = sadd.s32 1, %s1331_s20 }
   0xa   : > { %1779 = sst [smem:[#allocation25_spill]] %s1335_s21  ;;  %p27_p0 = scmp.ge.s32.totalorder %s26_s25, 4 }
   0xb   : > { %1780 = sst [smem:[#allocation26_spill]] %s1339_s22  ;;  %s29_s26 = sadd.s32 1, %s1335_s21 }
   0xc   : > { %p111_p1 = scmp.ne.s32.totalorder %s1319_s17, %s1315_s16  ;;  %p112_p2 = scmp.eq.s32.totalorder %s911_s23, 7 }
   0xd   : > { %s1808_s25 = smov (%p27_p0, %s26_s25), 0  ;;  %s1810_s26 = smov (!%p27_p0, %s29_s26), %s1335_s21 }
   0xe   : > { %1781 = sst [smem:[#allocation27_spill]] %s1808_s25  ;;  %s97_s27 = ssub.s32 %s1331_s20, %s1808_s25 }
   0xf   : > { %p1440_p3 = por %p112_p2, %p111_p1  ;;  %p31_p4 = scmp.ge.s32.totalorder %s1810_s26, 2 }
  0x10   : > { %p117_p5 = scmp.ne.s32.totalorder %s1315_s16, %s1311_s15  ;;  %p118_p6 = scmp.eq.s32.totalorder %s912_s24, 7 }
  0x11   : > { %s1782_s28 = scalar_select %p1440_p3, 1, 0 }
  0x12   : > { %p914_p7 = scmp.ge.s32.totalorder %s1339_s22, 1  ;;  %s1812_s26 = smov (%p31_p4, %s1810_s26), 0 }
  0x13   : > { %1783 = sst [smem:[#allocation28_spill]] %s1812_s26  ;;  %p1449_p8 = por %p118_p6, %p117_p5 }
  0x14   : > { %p145_p9 = scmp.lt.s32.totalorder %s1339_s22, 9  ;;  %s96_s30 = ssub.s32 %s1335_s21, %s1812_s26 }
  0x15   : > { %s1784_s29 = scalar_select %p1449_p8, 1, 0 }
  0x16   : > { %s101_s5 = sadd.s32 1, %s1319_s17  ;;  %s98_s6 = sor.u32 %s97_s27, %s96_s30 }
  0x17   : > { %1785 = sst [smem:[#allocation29_spill]] %s1784_s29  ;;  %p146_p10 = pnand %p914_p7, %p145_p9 }
  0x18   : > { %p99_p11 = scmp.eq.s32.totalorder %s98_s6, 0  ;;  %s1762_s8 = sand.u32 (!%p146_p10), 1, %s1315_s16  }
  0x19   : > { %149 = sbr.rel (%p146_p10) target bundleno = 1036 (0x40c), region = 32  ;;  %p165_p12 = scmp.lt.s32.totalorder (!%p146_p10), %s1323_s18, 0 }
  0x1a   : > { %s1458_s7 = scalar_select %p99_p11, %s1319_s17, %s101_s5  }
  0x1b   : > { %s915_s9 = sshll.u32 (!%p146_p10), %s1762_s8, 4  ;;  %s166_s10 = ssub.s32 (!%p146_p10), 0, %s1323_s18 }
  0x1c   : > { %1786 = sst [smem:[#allocation30_spill]] %s1458_s7  ;;  %s916_s11 = smin.u32 (!%p146_p10), %s1323_s18, %s166_s10 }
  0x1d   : > { %s168_s12 = sand.u32 (!%p146_p10), 1, %s916_s11   ;;  %s1469_s24 = scalar_lea.vmem (!%p146_p10), [#allocation4], %s915_s9 }
  0x1e   : > { %s169_s13 = ssub.s32 (!%p146_p10), 0, %s168_s12  ;;  %p919_p0 = scmp.ne.s32.totalorder (!%p146_p10), %s1323_s18, 0 }
  0x20   : > { %s1814_s13 = smov (!%p165_p12, %s169_s13), %s168_s12  ;;  %181 = sbr.rel (%p919_p0) target bundleno = 78 (0x4e), region = 36 }
  0x21   : > { %p918_p13 = scmp.lt.s32.totalorder %s1814_s13, 0  ;;  %s175_s14 = sadd.s32 2, %s1814_s13  ;;  %vm197_vm0 = vcmask (!%p919_p0), 1044352  }
  0x22   : > { %s963_s27 = sshll.u32 (!%p919_p0), %s1327_s19, 9  ;;  %s1341_s10 = smov (!%p919_p0), [#allocation2 + $0x4]  }
  0x23   : > { %s1816_s14 = smov (!%p918_p13, %s175_s14), %s1814_s13  ;;  %s1476_s6 = scalar_lea.hbm (!%p919_p0), %s1757_s0, %s963_s27 }
  0x24   : > { %s193_s11 = sshll.u32 (!%p919_p0), %s1341_s10, 4  ;;  %s1479_s9 = scalar_lea.hbm (!%p919_p0), %s1476_s6, 128  ;;  %s194_s11 = int_to_ptr.vmem [resolvable:$true] %s193_s11 }
  0x25   : > { %p1103_p1 = scmp.ne.s32.totalorder (!%p919_p0), %s1476_s6, %s1479_s9  ;;  %s1104_s30 = scalar_lea.hbm (!%p919_p0), %s1757_s0, 1024 }
  0x26   : > { %p1105_p2 = scmp.lt.u32.totalorder (!%p919_p0), %s1476_s6, %s1757_s0  ;;  %p1106_p4 = scmp.lt.u32.totalorder (!%p919_p0), %s1104_s30, %s1479_s9 }
  0x27   : > { %p1108_p6 = scmp.lt.u32.totalorder %s1479_s9, %s1476_s6 }
  0x28   : > { %p1107_p5 = por %p1106_p4, %p1105_p2 }
  0x2a   : > { %p1109_p7 = por %p1108_p6, %p1107_p5 }
  0x2c   : > { %p1110_p9 = pnand %p1109_p7, %p1103_p1 }
  0x2e   : > { %1113 = shalt.err (!%p1110_p9)  }
  0x2f   : > { %s1114_s10 = scalar_lea.vmem %s194_s11, 128  ;;  %s1342_s8 = smov [#allocation2]  }
  0x30   : > { %p1115_p10 = scmp.ne.s32.totalorder %s194_s11, %s1114_s10  ;;  %s1116_s23 = sshll.u32 %s1342_s8, 4  ;;  %s1117_s23 = int_to_ptr.vmem [resolvable:$false] %s1116_s23 }
  0x31   : > { %s1118_s26 = scalar_lea.vmem %s1117_s23, 512  ;;  %p1119_p11 = scmp.lt.s32.totalorder %s194_s11, %s1117_s23 }
  0x32   : > { %p1120_p12 = scmp.lt.s32.totalorder %s1118_s26, %s1114_s10 }
  0x34   : > { %p1121_p13 = por %p1120_p12, %p1119_p11 }
  0x36   : > { %p1122_p0 = pnand %p1121_p13, %p1115_p10 }
  0x38   : > { %1125 = shalt.err (!%p1122_p0)  }
  0x39   : > { %196 = dma.hbm_to_vmem [thread:$0]  %s1476_s6, 128, %s194_s11, [#allocation3]  ;;  %v1343_v0 = vmov 0.0  }
  0x3a   : > { %198 = vst.msk [vmem:[#allocation2] sm:$0xf] %vm197_vm0, %v1343_v0  ;;  %s1344_s12 = smov [#allocation2 + $0xc]   ;;  %s1150_s8 = scalar_lea.hbm %s1476_s6, 192 }
  0x3b   : > { %s211_s13 = sshll.u32 %s1344_s12, 4  ;;  %p1127_p1 = scmp.ne.s32.totalorder %s1479_s9, %s1150_s8  ;;  %s212_s13 = int_to_ptr.vmem [resolvable:$true] %s211_s13 }
  0x3c   : > { %p1129_p2 = scmp.lt.u32.totalorder %s1479_s9, %s1757_s0  ;;  %p1130_p4 = scmp.lt.u32.totalorder %s1104_s30, %s1150_s8 }
  0x3d   : > { %p1132_p6 = scmp.lt.u32.totalorder %s1150_s8, %s1479_s9 }
  0x3e   : > { %p1131_p5 = por %p1130_p4, %p1129_p2 }
  0x40   : > { %p1133_p7 = por %p1132_p6, %p1131_p5 }
  0x42   : > { %p1134_p9 = pnand %p1133_p7, %p1127_p1 }
  0x44   : > { %1137 = shalt.err (!%p1134_p9)  }
  0x45   : > { %s1138_s10 = scalar_lea.vmem %s212_s13, 64  ;;  %p1143_p11 = scmp.lt.s32.totalorder %s212_s13, %s1117_s23 }
  0x46   : > { %p1139_p10 = scmp.ne.s32.totalorder %s212_s13, %s1138_s10  ;;  %p1144_p12 = scmp.lt.s32.totalorder %s1118_s26, %s1138_s10 }
  0x48   : > { %p1145_p13 = por %p1144_p12, %p1143_p11 }
  0x4a   : > { %p1146_p0 = pnand %p1145_p13, %p1139_p10 }
  0x4c   : > { %1149 = shalt.err (!%p1146_p0)  }
  0x4d   : > { %214 = dma.hbm_to_vmem [thread:$0]  %s1479_s9, 64, %s212_s13, [#allocation3 + $0x2] }
  0x4e PF: > { %s1504_s6 = sadd.s32 1, %s1323_s18  ;;  %s1765_s11 = sshll.u32 %s1323_s18, 8 }
  0x4f   : > { %p1003_p1 = scmp.lt.s32.totalorder %s1504_s6, 4  ;;  %s1510_s23 = sadd.s32 256, %s1765_s11 }
  0x50   : > { %s1513_s26 = sshll.u32 %s1327_s19, 3  ;;  %s221_s9 = sshra.s32 %s1510_s23, 7 }
  0x51   : > { %s1787_s30 = ssub.s32 1, %s1816_s14  ;;  %s224_s13 = sadd.s32 %s1513_s26, %s221_s9 }
  0x52   : > { %s967_s12 = sshll.u32 %s1787_s30, 4  ;;  %s927_s8 = sshll.u32 %s224_s13, 6 }
  0x53   : > { %s1519_s27 = scalar_lea.vmem [#allocation2], %s967_s12  ;;  %s1525_s11 = scalar_lea.hbm %s1757_s0, %s927_s8 }
  0x54   : > { %s839_s5 = scalar_lea.vmem %s1519_s27, 4 [#allocation2]  ;;  %s1788_s21 = smov %s1787_s30 }
  0x55   : > { %s231_s19 = smul.u32 3, %s1788_s21  ;;  %s240_s20 = sshll.u32 %s839_s5, 4  ;;  %s241_s20 = int_to_ptr.vmem [resolvable:$true] %s240_s20 }
  0x56   : > { %s931_s7 = sadd.s32 4294967168, %s1510_s23  ;;  %s1151_s30 = scalar_lea.hbm %s1525_s11, 128 }
  0x57   : > { %s1530_s9 = scalar_lea.sflag [#allocation3], %s231_s19  ;;  %p1152_p2 = scmp.ne.s32.totalorder %s1525_s11, %s1151_s30 }
  0x58   : > { %s1539_s13 = scalar_lea.hbm %s1757_s0, 1024  ;;  %p1156_p6 = scmp.lt.u32.totalorder %s1525_s11, %s1757_s0 }
  0x59   : > { %p1153_p4 = pnand %p1152_p2, %p1003_p1  ;;  %p1157_p7 = scmp.lt.u32.totalorder %s1539_s13, %s1151_s30 }
  0x5a   : > { %p1159_p10 = scmp.lt.u32.totalorder %s1151_s30, %s1525_s11 }
  0x5b   : > { %p1154_p5 = pneg %p1153_p4  ;;  %p1158_p9 = por %p1157_p7, %p1156_p6 }
  0x5d   : > { %p1160_p11 = por %p1159_p10, %p1158_p9 }
  0x5f   : > { %p1161_p12 = pnand %p1160_p11, %p1154_p5 }
  0x61   : > { %1164 = shalt.err (!%p1161_p12)  }
  0x62   : > { %s1165_s21 = scalar_lea.vmem %s241_s20, 128  ;;  %s1345_s5 = smov [#allocation2]  }
  0x63   : > { %p1166_p13 = scmp.ne.s32.totalorder %s241_s20, %s1165_s21  ;;  %s1169_s19 = sshll.u32 %s1345_s5, 4  ;;  %s1549_s19 = int_to_ptr.vmem [resolvable:$false] %s1169_s19 }
  0x64   : > { %s1552_s12 = scalar_lea.vmem %s1549_s19, 512  ;;  %p1172_p4 = scmp.lt.s32.totalorder %s241_s20, %s1549_s19 }
  0x65   : > { %p1167_p0 = pnand %p1166_p13, %p1003_p1  ;;  %p1173_p6 = scmp.lt.s32.totalorder %s1552_s12, %s1165_s21 }
  0x67   : > { %p1168_p2 = pneg %p1167_p0  ;;  %p1174_p7 = por %p1173_p6, %p1172_p4 }
  0x69   : > { %p1175_p5 = pnand %p1174_p7, %p1168_p2 }
  0x6b   : > { %1178 = shalt.err (!%p1175_p5)  }
  0x6c   : > { %989 = dma.hbm_to_vmem [thread:$0]  (%p1003_p1), %s1525_s11, 128, %s241_s20, %s1530_s9 }
  0x6d   : > { %s245_s30 = sshra.s32 %s931_s7, 7  ;;  %s850_s8 = scalar_lea.sflag %s1530_s9, 1 [#allocation3] }
  0x6e   : > { %s247_s25 = sadd.s32 %s1513_s26, %s245_s30  ;;  %s261_s21 = sshll.u32 %s1519_s27, 4  ;;  %s262_s21 = int_to_ptr.vmem [resolvable:$true] %s261_s21 }
  0x6f   : > { %s932_s10 = sshll.u32 %s247_s25, 6 }
  0x70   : > { %s249_s29 = scalar_lea.hbm %s1757_s0, %s932_s10 }
  0x71   : > { %s1179_s15 = scalar_lea.hbm %s249_s29, 64  ;;  %p1184_p12 = scmp.lt.u32.totalorder %s249_s29, %s1757_s0 }
  0x72   : > { %p1180_p9 = scmp.ne.s32.totalorder %s249_s29, %s1179_s15  ;;  %p1185_p13 = scmp.lt.u32.totalorder %s1539_s13, %s1179_s15 }
  0x73   : > { %p1187_p2 = scmp.lt.u32.totalorder %s1179_s15, %s249_s29 }
  0x74   : > { %p1181_p10 = pnand %p1180_p9, %p1003_p1  ;;  %p1186_p0 = por %p1185_p13, %p1184_p12 }
  0x76   : > { %p1182_p11 = pneg %p1181_p10  ;;  %p1188_p4 = por %p1187_p2, %p1186_p0 }
  0x78   : > { %p1189_p6 = pnand %p1188_p4, %p1182_p11 }
  0x7a   : > { %1192 = shalt.err (!%p1189_p6)  }
  0x7b   : > { %s1193_s20 = scalar_lea.vmem %s262_s21, 64  ;;  %p1200_p9 = scmp.lt.s32.totalorder %s262_s21, %s1549_s19 }
  0x7c   : > { %p1194_p7 = scmp.ne.s32.totalorder %s262_s21, %s1193_s20  ;;  %p1201_p10 = scmp.lt.s32.totalorder %s1552_s12, %s1193_s20 }
  0x7e   : > { %p1195_p5 = pnand %p1194_p7, %p1003_p1  ;;  %p1202_p3 = por %p1201_p10, %p1200_p9 }
  0x80   : > { %p1196_p8 = pneg %p1195_p5 }
  0x82   : > { %p1203_p12 = pnand %p1202_p3, %p1196_p8 }
  0x84   : > { %1206 = shalt.err (!%p1203_p12)  }
  0x85   : > { %990 = dma.hbm_to_vmem [thread:$0]  (%p1003_p1), %s249_s29, 64, %s262_s21, %s850_s8 }
  0x86   : > { %p1004_p11 = scmp.lt.s32.totalorder %s1504_s6, 3  ;;  %s1789_s4 = sshll.u32 %s1323_s18, 8 }
  0x87   : > { %s970_s15 = sadd.s32 512, %s1789_s4  ;;  %s858_s22 = scalar_lea.vmem %s1519_s27, 12 [#allocation2] }
  0x88   : > { %s271_s17 = sshra.s32 %s970_s15, 7  ;;  %s861_s11 = scalar_lea.sflag %s1530_s9, 2 [#allocation3] }
  0x89   : > { %s274_s7 = sadd.s32 %s1513_s26, %s271_s17  ;;  %s291_s30 = sshll.u32 %s858_s22, 4  ;;  %s292_s30 = int_to_ptr.vmem [resolvable:$true] %s291_s30 }
  0x8a   : > { %s937_s23 = sshll.u32 %s274_s7, 6 }
  0x8b   : > { %s276_s5 = scalar_lea.hbm %s1757_s0, %s937_s23 }
  0x8c   : > { %s1207_s20 = scalar_lea.hbm %s276_s5, 64  ;;  %p1212_p13 = scmp.lt.u32.totalorder %s276_s5, %s1757_s0 }
  0x8d   : > { %p1208_p3 = scmp.ne.s32.totalorder %s276_s5, %s1207_s20  ;;  %p1213_p0 = scmp.lt.u32.totalorder %s1539_s13, %s1207_s20 }
  0x8e   : > { %p1215_p4 = scmp.lt.u32.totalorder %s1207_s20, %s276_s5 }
  0x8f   : > { %p1209_p8 = pnand %p1208_p3, %p1004_p11  ;;  %p1214_p2 = por %p1213_p0, %p1212_p13 }
  0x91   : > { %p1210_p1 = pneg %p1209_p8  ;;  %p1216_p6 = por %p1215_p4, %p1214_p2 }
  0x93   : > { %p1217_p7 = pnand %p1216_p6, %p1210_p1 }
  0x95   : > { %1220 = shalt.err (!%p1217_p7)  }
  0x96   : > { %s1221_s9 = scalar_lea.vmem %s292_s30, 64  ;;  %p1228_p12 = scmp.lt.s32.totalorder %s292_s30, %s1549_s19 }
  0x97   : > { %p1222_p5 = scmp.ne.s32.totalorder %s292_s30, %s1221_s9  ;;  %p1229_p3 = scmp.lt.s32.totalorder %s1552_s12, %s1221_s9 }
  0x99   : > { %p1223_p9 = pnand %p1222_p5, %p1004_p11  ;;  %p1230_p8 = por %p1229_p3, %p1228_p12 }
  0x9b   : > { %p1224_p10 = pneg %p1223_p9 }
  0x9d   : > { %p1231_p0 = pnand %p1230_p8, %p1224_p10 }
  0x9f   : > { %1234 = shalt.err (!%p1231_p0)  }
  0xa0   : > { %992 = dma.hbm_to_vmem [thread:$0]  (%p1004_p11), %s276_s5, 64, %s292_s30, %s861_s11 }
  0xa1   : > { %p940_p13 = scmp.ne.s32.totalorder %s1504_s6, 3 }
  0xa2   : > { %vm302_vm1 = vcmask (!%p940_p13), 125952   ;;  %v1346_v1 = vmov (!%p940_p13), 0.0  }
  0xa3   : > { %298 = sbr.rel (%p940_p13) target bundleno = 170 (0xaa), region = 68  ;;  %303 = vst.msk [vmem:[%s1519_s27 + $0xc] sm:$0xf] (!%p940_p13), %vm302_vm1, %v1346_v1 }
  0xaa PF: > { %s304_s13 = smul.u32 3, %s1816_s14 }
  0xac   : > { %s305_s21 = scalar_lea.sflag [#allocation3], %s304_s13 }
  0xad   : > { %1295 = dma.done.wait %s305_s21, 128 }
  0xae   : > { %1296 = vsyncadd %s305_s21, 4294967168  ;;  %p1005_p1 = scmp.gt.s32.totalorder %s1323_s18, 0  ;;  %s868_s19 = scalar_lea.sflag %s305_s21, 1 [#allocation3] }
  0xb0   : > { %1298 = dma.done.wait (%p1005_p1), %s868_s19, 64 }
  0xb1   : > { %1300 = vsyncadd (%p1005_p1), %s868_s19, 4294967232  ;;  %p1006_p11 = scmp.lt.s32.totalorder %s1323_s18, 3  ;;  %s871_s12 = scalar_lea.sflag %s305_s21, 2 [#allocation3] }
  0xb3   : > { %1302 = dma.done.wait (%p1006_p11), %s871_s12, 64 }
  0xb4   : > { %1304 = vsyncadd (%p1006_p11), %s871_s12, 4294967232  ;;  %v1347_v2 = vmov 3   ;;  %v1348_v3 = vmov 5   ;;  %v1609_v4 = vld [vmem:[%s1758_s1] sm:$0xf]  ;;  %v1349_v5 = vmov 6  }
  0xb5   : > { %1092 = vset.pattern.permute.xlu0 %v1347_v2  ;;  %1094 = vset.pattern.permute.xlu1 %v1348_v3  ;;  %v1350_v6 = vmov 8   ;;  %v1351_v7 = vmov 0   ;;  %v1352_v8 = vmov 2   ;;  %v1353_v9 = vmov 4   ;;  %s973_s4 = sshll.u32 %s1816_s14, 4  ;;  %s1355_s17 = smov 112  }
  0xb6   : > { %360 = vperm.xlu0 %1092, %v1609_v4   ;;  %420 = vperm.xlu1 %1094, %v1609_v4   ;;  %v1354_v10 = vmov 7   ;;  %s1618_s15 = scalar_lea.vmem [#allocation2], %s973_s4  ;;  %s1356_s14 = smov 96   ;;  %v1357_v27 = vmov 1   ;;  %vm368_vm2 = vcmask 916480   ;;  %vm381_vm3 = vcmask 785408  }
  0xb7   : > { %v1621_v11 = vld [vmem:[%s1618_s15 + $0x4] sm:$0xf]  ;;  %v1625_v14 = vld [vmem:[%s1618_s15 + $0x8] sm:$0xf]  ;;  %s1358_s22 = smov 17   ;;  %s1359_s7 = smov 15  }
  0xb8   : > { %v1629_v15 = vld [vmem:[%s1618_s15 + $0x4] sm:$0xff]  ;;  %vm449_vm4 = vcmask 138240   ;;  %vm452_vm5 = vcmask 7168   ;;  %vm460_vm7 = vcmask 121856   ;;  %vm463_vm8 = vcmask 1039360   ;;  %s1362_s11 = smov 16  }
  0xb9   : > { %v1634_v20 = vld [vmem:[%s1618_s15 + $0x8] sm:$0xff]  ;;  %v1651_v32 = vld [vmem:[%s1618_s15] sm:$0xff]  ;;  %vm1361_vm10 = vmmov 0   ;;  %vm496_vm11 = vcmask 130048   ;;  %vm502_vm12 = vcmask 1043456   ;;  %vm498_vm13 = vcmask 31744  }
  0xba   : > { %1093 = vset.pattern.permute.xlu0 %v1349_v5  ;;  %1095 = vset.pattern.permute.xlu1 %v1350_v6  ;;  %s952_s5 = sshll.u32 %s1323_s18, 1  ;;  %s761_s8 = sshll.u32 %s1469_s24, 4  ;;  %s1703_s8 = int_to_ptr.vmem [resolvable:$true] %s761_s8 }
  0xbb   : > { %373 = vperm.xlu0 %1093, %v1609_v4   ;;  %432 = vperm.xlu1 %1095, %v1609_v4   ;;  %s757_s20 = sadd.s32 %s952_s5, %s1513_s26  ;;  %s1790_s21 = sld [smem:[#allocation31_spill]] }
  0xbc   : > { %s954_s29 = sshll.u32 %s757_s20, 7  ;;  %s1792_s18 = sand.u32 1, %s1315_s16  }
  0xbd   : > { %s745_s26 = scalar_lea.sflag [#allocation5], %s1792_s18  ;;  %s1235_s6 = scalar_lea.vmem %s1703_s8, 256 }
  0xbe   : > { %p1236_p2 = scmp.ne.s32.totalorder %s1703_s8, %s1235_s6  ;;  %p1793_p4 = scmp.ne.s32.totalorder %s1782_s28, 0 }
  0xbf   : > { %1096 = vset.pattern.permute.xlu1 %v1351_v7  ;;  %1097 = vset.pattern.permute.xlu0 %v1352_v8  ;;  %s1363_s27 = smov [#allocation4]  }
  0xc0   : > { %355 = vperm.xlu1 %1096, %v1609_v4   ;;  %415 = vperm.xlu0 %1097, %v1609_v4   ;;  %p1237_p6 = pnand %p1236_p2, %p1793_p4  ;;  %s1239_s4 = sshll.u32 %s1363_s27, 4  ;;  %s1240_s4 = int_to_ptr.vmem [resolvable:$false] %s1239_s4 }
  0xc1   : > { %s1791_s12 = smov %s1790_s21  ;;  %s1701_s19 = scalar_lea.hbm %s1790_s21, %s954_s29 }
  0xc2   : > { %p1238_p7 = pneg %p1237_p6  ;;  %s1241_s15 = scalar_lea.vmem %s1240_s4, 512 }
  0xc3   : > { %p1242_p5 = scmp.lt.s32.totalorder %s1703_s8, %s1240_s4  ;;  %p1243_p9 = scmp.lt.s32.totalorder %s1241_s15, %s1235_s6 }
  0xc4   : > { %1098 = vset.pattern.permute.xlu0 %v1353_v9  ;;  %1099 = vset.pattern.permute.xlu1 %v1354_v10 }
  0xc5   : > { %p1244_p10 = por %p1243_p9, %p1242_p5 }
  0xc7   : > { %p1245_p12 = pnand %p1244_p10, %p1238_p7 }
 0x135   : > { %v361_v12 = vpop.permute.xlu0 %360  ;;  %v421_v16 = vpop.permute.xlu1 %420 }
 0x136   : > { %v363_v13 = vmul.f32 %v361_v12, %v1621_v11  ;;  %v580_v17 = vmul.f32 %v1625_v14, %v361_v12  ;;  %v423_v21 = vmul.f32 %v421_v16, %v1621_v11  ;;  %v614_v25 = vmul.f32 %v1625_v14, %v421_v16 }
 0x138   : > { %365 = vrot.lane.b32.xlu1 %v363_v13, %s1355_s17 }
 0x13a   : > { %v374_v18 = vpop.permute.xlu0 %373  ;;  %v433_v22 = vpop.permute.xlu1 %432 }
 0x13b   : > { %v376_v19 = vmul.f32 %v374_v18, %v1629_v15  ;;  %v588_v23 = vmul.f32 %v1634_v20, %v374_v18  ;;  %v435_v24 = vmul.f32 %v433_v22, %v1629_v15  ;;  %v622_v26 = vmul.f32 %v1634_v20, %v433_v22 }
 0x13c   : > { %582 = vrot.lane.b32.xlu1 %v580_v17, %s1355_s17  ;;  %v331_v17 = vlaneseq }
 0x13d   : > { %378 = vrot.lane.b32.xlu0 %v376_v19, %s1356_s14 }
 0x13f   : > { %v356_v28 = vpop.permute.xlu1 %355  ;;  %v416_v29 = vpop.permute.xlu0 %415 }
 0x140   : > { %425 = vrot.lane.b32.xlu1 %v423_v21, %s1355_s17  ;;  %v358_v35 = vmul.f32 %v356_v28, %v1651_v32  ;;  %v579_v43 = vmul.f32 %v356_v28, %v1629_v15  ;;  %v418_v53 = vmul.f32 %v416_v29, %v1651_v32  ;;  %v613_v61 = vmul.f32 %v416_v29, %v1629_v15 }
 0x141   : > { %590 = vrot.lane.b32.xlu0 %v588_v23, %s1356_s14 }
 0x144   : > { %616 = vrot.lane.b32.xlu1 %v614_v25, %s1355_s17 }
 0x145   : > { %437 = vrot.lane.b32.xlu0 %v435_v24, %s1356_s14 }
 0x148   : > { %624 = vrot.lane.b32.xlu1 %v622_v26, %s1356_s14 }
 0x149   : > { %391 = vperm.xlu0 %1098, %v1609_v4  }
 0x14c   : > { %403 = vperm.xlu1 %1099, %v1609_v4  }
 0x14d   : > { %1101 = vset.pattern.permute.xlu0 %v1351_v7 }
 0x150   : > { %1100 = vset.pattern.permute.xlu1 %v1357_v27 }
 0x1aa   : > { %v366_v30 = vpop.permute.xlu1 %365 }
 0x1ab   : > { %v367_v31 = vrot.slane %v366_v30, 4 }
 0x1ad   : > { %v369_v33 = vsel %vm368_vm2, %v367_v31, %v366_v30 }
 0x1ae   : > { %v583_v34 = vpop.permute.xlu1 %582  ;;  %v371_v39 = vadd.f32 %v369_v33, %v358_v35 }
 0x1af   : > { %v584_v36 = vrot.slane %v583_v34, 4  ;;  %v379_v37 = vpop.permute.xlu0 %378 }
 0x1b0   : > { %v380_v38 = vrot.slane %v379_v37, 4 }
 0x1b1   : > { %v585_v40 = vsel %vm368_vm2, %v584_v36, %v583_v34 }
 0x1b2   : > { %v382_v41 = vsel %vm381_vm3, %v380_v38, %v379_v37  ;;  %v426_v42 = vpop.permute.xlu1 %425  ;;  %v587_v48 = vadd.f32 %v585_v40, %v579_v43 }
 0x1b3   : > { %v384_v44 = vadd.f32 %v382_v41, %v371_v39  ;;  %v427_v45 = vrot.slane %v426_v42, 4  ;;  %v591_v46 = vpop.permute.xlu0 %590 }
 0x1b4   : > { %v592_v47 = vrot.slane %v591_v46, 4 }
 0x1b5   : > { %445 = vrot.lane.b32.xlu1 %v384_v44, %s1358_s22  ;;  %v444_v49 = vcombine.high %v384_v44, %v384_v44  ;;  %v428_v50 = vsel %vm368_vm2, %v427_v45, %v426_v42 }
 0x1b6   : > { %v593_v51 = vsel %vm381_vm3, %v592_v47, %v591_v46  ;;  %v617_v52 = vpop.permute.xlu1 %616  ;;  %v430_v58 = vadd.f32 %v428_v50, %v418_v53  ;;  %v1360_v50 = vmov 0.0  }
 0x1b7   : > { %v595_v54 = vadd.f32 %v593_v51, %v587_v48  ;;  %v618_v55 = vrot.slane %v617_v52, 4  ;;  %447 = vrot.lane.b32.xlu0 %v444_v49, %s1358_s22  ;;  %v438_v56 = vpop.permute.xlu0 %437  ;;  %978 = vmatprep.subr.mxu0 %v1360_v50 }
 0x1b8   : > { %v439_v57 = vrot.slane %v438_v56, 4  ;;  %983 = vmatprep.subr.mxu1 %v1360_v50  ;;  %980 = vmatprep.mubr.msk.f32.mxu0 %vm1361_vm10, %v1360_v50 }
 0x1b9   : > { %v619_v59 = vsel %vm368_vm2, %v618_v55, %v617_v52  ;;  %632 = vrot.lane.b32.xlu1 %v595_v54, %s1358_s22  ;;  %v631_v60 = vcombine.high %v595_v54, %v595_v54  ;;  %985 = vmatprep.mubr.msk.f32.mxu1 %vm1361_vm10, %v1360_v50 }
 0x1ba   : > { %v440_v62 = vsel %vm381_vm3, %v439_v57, %v438_v56  ;;  %v625_v63 = vpop.permute.xlu1 %624  ;;  %v621_v2 = vadd.f32 %v619_v59, %v613_v61 }
 0x1bb   : > { %v442_v0 = vadd.f32 %v440_v62, %v430_v58  ;;  %v626_v1 = vrot.slane %v625_v63, 4  ;;  %634 = vrot.lane.b32.xlu0 %v631_v60, %s1358_s22 }
 0x1bd   : > { %v627_v3 = vsel %vm381_vm3, %v626_v1, %v625_v63  ;;  %456 = vrot.lane.b32.xlu1 %v442_v0, %s1359_s7  ;;  %v455_v5 = vcombine.high %v442_v0, %v442_v0 }
 0x1be   : > { %v629_v6 = vadd.f32 %v627_v3, %v621_v2 }
 0x1bf   : > { %458 = vrot.lane.b32.xlu0 %v455_v5, %s1359_s7 }
 0x1c0   : > { %v640_v7 = vcombine.high %v629_v6, %v629_v6 }
 0x1c1   : > { %641 = vrot.lane.b32.xlu1 %v629_v6, %s1359_s7 }
 0x1c3   : > { %643 = vrot.lane.b32.xlu0 %v640_v7, %s1359_s7 }
 0x1c5   : > { %386 = vperm.xlu1 %1100, %v1609_v4   ;;  %v332_v4 = vand.u32 127, %v331_v17  ;;  %v329_v17 = vld [vmem:[%s1759_s2] sm:$0xff] }
 0x1c7   : > { %v337_v18 = vand.u32 15, %v332_v4 }
 0x1c8   : > { %v392_v8 = vpop.permute.xlu0 %391 }
 0x1c9   : > { %v394_v9 = vmul.f32 %v392_v8, %v1621_v11  ;;  %v597_v10 = vmul.f32 %v1625_v14, %v392_v8  ;;  %vm345_vm6 = vcmp.ge.s32.totalorder %v337_v18, 1  ;;  %vm346_vm9 = vcmp.le.s32.totalorder %v337_v18, 14 }
 0x1cb   : > { %396 = vrot.lane.b32.xlu0 %v394_v9, %s1355_s17  ;;  %599 = vrot.lane.b32.xlu1 %v597_v10, %s1355_s17  ;;  %v404_v12 = vpop.permute.xlu1 %403 }
 0x1cc   : > { %v406_v13 = vmul.f32 %v404_v12, %v1629_v15  ;;  %v605_v16 = vmul.f32 %v1634_v20, %v404_v12  ;;  %v330_v12 = vld [vmem:[%s1760_s3] sm:$0xff] }
 0x1cf   : > { %408 = vrot.lane.b32.xlu0 %v406_v13, %s1356_s14  ;;  %607 = vrot.lane.b32.xlu1 %v605_v16, %s1356_s14 }
 0x227   : > { %v446_v19 = vpop.permute.xlu1 %445 }
 0x229   : > { %v448_v11 = vpop.permute.xlu0 %447 }
 0x22a   : > { %v450_v14 = vsel %vm449_vm4, %v446_v19, %v448_v11 }
 0x22b   : > { %v633_v21 = vpop.permute.xlu1 %632  ;;  %v453_v22 = vsel %vm452_vm5, 0.0, %v450_v14 }
 0x22c   : > { %v467_v23 = vsel %vm345_vm6, %v453_v22, 0.0 }
 0x22d   : > { %469 = vrot.lane.b32.xlu0 %v467_v23, %s1355_s17  ;;  %v635_v24 = vpop.permute.xlu0 %634 }
 0x22e   : > { %v636_v20 = vsel %vm449_vm4, %v633_v21, %v635_v24 }
 0x22f   : > { %v457_v25 = vpop.permute.xlu1 %456  ;;  %v638_v26 = vsel %vm452_vm5, 0.0, %v636_v20 }
 0x230   : > { %v648_v27 = vsel %vm345_vm6, %v638_v26, 0.0 }
 0x231   : > { %650 = vrot.lane.b32.xlu1 %v648_v27, %s1355_s17  ;;  %v459_v28 = vpop.permute.xlu0 %458 }
 0x232   : > { %v461_v29 = vsel %vm460_vm7, %v457_v25, %v459_v28 }
 0x233   : > { %v464_v30 = vsel %vm463_vm8, %v461_v29, 0.0  ;;  %v642_v33 = vpop.permute.xlu1 %641 }
 0x234   : > { %v477_v31 = vsel %vm346_vm9, %v464_v30, 0.0 }
 0x235   : > { %479 = vrot.lane.b32.xlu0 %v477_v31, %s1355_s17  ;;  %v644_v34 = vpop.permute.xlu0 %643 }
 0x236   : > { %v645_v35 = vsel %vm460_vm7, %v642_v33, %v644_v34 }
 0x237   : > { %v647_v36 = vsel %vm463_vm8, %v645_v35, 0.0 }
 0x238   : > { %v656_v37 = vsel %vm346_vm9, %v647_v36, 0.0 }
 0x239   : > { %658 = vrot.lane.b32.xlu1 %v656_v37, %s1355_s17 }
 0x23d   : > { %v397_v39 = vpop.permute.xlu0 %396 }
 0x23e   : > { %v398_v42 = vrot.slane %v397_v39, 4 }
 0x240   : > { %v399_v47 = vsel %vm368_vm2, %v398_v42, %v397_v39 }
 0x241   : > { %v409_v41 = vpop.permute.xlu0 %408 }
 0x242   : > { %v410_v48 = vrot.slane %v409_v41, 4 }
 0x244   : > { %v387_v38 = vpop.permute.xlu1 %386  ;;  %v411_v56 = vsel %vm381_vm3, %v410_v48, %v409_v41 }
 0x245   : > { %v389_v43 = vmul.f32 %v387_v38, %v1651_v32  ;;  %v596_v51 = vmul.f32 %v387_v38, %v1629_v15 }
 0x247   : > { %v401_v52 = vadd.f32 %v399_v47, %v389_v43 }
 0x248   : > { %v600_v40 = vpop.permute.xlu1 %599 }
 0x249   : > { %v601_v46 = vrot.slane %v600_v40, 4  ;;  %v413_v59 = vadd.f32 %v411_v56, %v401_v52 }
 0x24b   : > { %v602_v54 = vsel %vm368_vm2, %v601_v46, %v600_v40 }
 0x24c   : > { %v608_v44 = vpop.permute.xlu1 %607  ;;  %v604_v58 = vadd.f32 %v602_v54, %v596_v51 }
 0x24d   : > { %v609_v55 = vrot.slane %v608_v44, 4 }
 0x24f   : > { %v610_v61 = vsel %vm381_vm3, %v609_v55, %v608_v44 }
 0x250   : > { %v612_v1 = vadd.f32 %v610_v61, %v604_v58 }
 0x29f   : > { %v470_v45 = vpop.permute.xlu0 %469 }
 0x2a0   : > { %v471_v49 = vrot.slane %v470_v45, 4 }
 0x2a2   : > { %v472_v32 = vsel %vm368_vm2, %v471_v49, %v470_v45 }
 0x2a3   : > { %v651_v53 = vpop.permute.xlu1 %650  ;;  %v474_v15 = vadd.f32 %v472_v32, %v413_v59 }
 0x2a4   : > { %v652_v57 = vrot.slane %v651_v53, 4 }
 0x2a6   : > { %v653_v63 = vsel %vm368_vm2, %v652_v57, %v651_v53 }
 0x2a7   : > { %v480_v60 = vpop.permute.xlu0 %479  ;;  %v655_v6 = vadd.f32 %v653_v63, %v612_v1 }
 0x2a8   : > { %v481_v62 = vrot.slane %v480_v60, 4 }
 0x2aa   : > { %v482_v0 = vsel %vm368_vm2, %v481_v62, %v480_v60 }
 0x2ab   : > { %v484_v2 = vadd.f32 %v482_v0, %v474_v15  ;;  %v659_v3 = vpop.permute.xlu1 %658 }
 0x2ac   : > { %v660_v5 = vrot.slane %v659_v3, 4 }
 0x2ad   : > { %492 = vrot.lane.b32.xlu0 %v484_v2, %s1362_s11  ;;  %v491_v7 = vcombine.high %v484_v2, %v484_v2 }
 0x2ae   : > { %v661_v8 = vsel %vm368_vm2, %v660_v5, %v659_v3 }
 0x2af   : > { %v663_v9 = vadd.f32 %v661_v8, %v655_v6  ;;  %494 = vrot.lane.b32.xlu1 %v491_v7, %s1362_s11 }
 0x2b1   : > { %666 = vrot.lane.b32.xlu0 %v663_v9, %s1362_s11  ;;  %v665_v10 = vcombine.high %v663_v9, %v663_v9 }
 0x2b3   : > { %668 = vrot.lane.b32.xlu1 %v665_v10, %s1362_s11 }
 0x2b5   : > { %487 = vperm.xlu0 %1101, %v330_v12  }
 0x31f   : > { %v493_v13 = vpop.permute.xlu0 %492 }
 0x321   : > { %v495_v16 = vpop.permute.xlu1 %494 }
 0x322   : > { %v497_v4 = vsel %vm496_vm11, %v493_v13, %v495_v16 }
 0x323   : > { %979 = vmatpush3.msk.msra.mxu0 %vm502_vm12, %v497_v4  ;;  %v667_v18 = vpop.permute.xlu0 %666 }
 0x324   : > { %981 = vmatmul.mubr.msk.f32.vlgmr.msra.gmra.mrb[0].mxu0 %vm498_vm13, %v329_v17 }
 0x325   : > { %v669_v19 = vpop.permute.xlu1 %668 }
 0x326   : > { %v670_v11 = vsel %vm496_vm11, %v667_v18, %v669_v19 }
 0x327   : > { %984 = vmatpush3.msk.msra.mxu1 %vm502_vm12, %v670_v11 }
 0x328   : > { %986 = vmatmul.mubr.msk.f32.vlgmr.msra.gmra.mrb[0].mxu1 %vm498_vm13, %v329_v17 }
 0x334   : > { %v488_v14 = vpop.permute.xlu0 %487 }
 0x3f7   : > { %v571_v21 = vpop.f32.mrb[0].mxu0 }
 0x3f8   : > { %v572_v22 = vadd.f32 %v571_v21, %v488_v14  ;;  %v982_v23 = vpop.f32.mrb[1].mxu0 }
 0x3fa   : > { %575 = vst [vmem:[%s1469_s24] sm:$0xff] %v572_v22 }
 0x3fb   : > { %v739_v24 = vpop.f32.mrb[0].mxu1 }
 0x3fc   : > { %v740_v20 = vadd.f32 %v739_v24, %v488_v14  ;;  %v987_v25 = vpop.f32.mrb[1].mxu1 }
 0x3fe   : > { %743 = vst [vmem:[%s1469_s24 + $0x8] sm:$0xff] %v740_v20 }
 0x3ff   : > { %1248 = shalt.err (!%p1245_p12)
}
 0x400   : > { %s1249_s24 = scalar_lea.hbm %s1701_s19, 256  ;;  %s1253_s22 = scalar_lea.hbm %s1791_s12, 2048 }
 0x401   : > { %p1250_p3 = scmp.ne.s32.totalorder %s1701_s19, %s1249_s24  ;;  %p1254_p13 = scmp.lt.u32.totalorder %s1701_s19, %s1791_s12 }
 0x402   : > { %p1255_p1 = scmp.lt.u32.totalorder %s1253_s22, %s1249_s24  ;;  %p1257_p2 = scmp.lt.u32.totalorder %s1249_s24, %s1701_s19 }
 0x403   : > { %p1251_p8 = pnand %p1250_p3, %p1793_p4 }
 0x404   : > { %p1256_p11 = por %p1255_p1, %p1254_p13 }
 0x405   : > { %p1252_p0 = pneg %p1251_p8 }
 0x406   : > { %p1258_p6 = por %p1257_p2, %p1256_p11 }
 0x408   : > { %p1259_p7 = pnand %p1258_p6, %p1252_p0 }
 0x40a   : > { %1262 = shalt.err (!%p1259_p7)
}
 0x40b   : > { %997 = dma.vmem_to_hbm [thread:$0]  (%p1793_p4), %s1703_s8, 256, %s1701_s19, %s745_s26  }
 0x40c PF: > { %s1794_s23 = sld [smem:[#allocation26_spill]]  ;;  %s1795_s30 = sld [smem:[#allocation22_spill]] }
 0x40d   : > { %s1796_s25 = sld [smem:[#allocation29_spill]] }
 0x412   : > { %p1007_p5 = scmp.ge.s32.totalorder %s1794_s23, 2  ;;  %s773_s10 = sand.u32 1, %s1795_s30  }
 0x413   : > { %p1797_p9 = scmp.ne.s32.totalorder %s1796_s25, 0  ;;  %s774_s5 = scalar_lea.sflag [#allocation5], %s773_s10 }
 0x415   : > { %p1000_p10 = pnand %p1007_p5, %p1797_p9 }
 0x417   : > { %1306 = dma.done.wait (!%p1000_p10), %s774_s5, 256  }
 0x418   : > { %1308 = vsyncadd (!%p1000_p10), %s774_s5, 4294967040  ;;  %s17_s22 = sadd.s32 1, %s1794_s23   ;;  %s1798_s20 = sld [smem:[#allocation23_spill]] }
 0x419   : > { %p14_p12 = scmp.ge.s32.totalorder %s17_s22, 10   ;;  %s1799_s17 = sld [smem:[#allocation30_spill]] }
 0x41a   : > { %s1800_s18 = sld [smem:[#allocation24_spill]]  ;;  %s1801_s19 = sld [smem:[#allocation25_spill]] }
 0x41b   : > { %s1802_s28 = sld [smem:[#allocation27_spill]]  ;;  %s1803_s21 = sld [smem:[#allocation28_spill]] }
 0x41c   : > { %s1804_s15 = smov %s1315_s16  ;;  %16 = sbr.rel (!%p14_p12) target bundleno = 7 (0x7), region = 132 }
 0x41e   : > { %s1805_s16 = smov %s1798_s20 }
 0x421   : > { %s1806_s20 = smov %s1802_s28 }
 0x423   :  { %779 = vsyncpa [#allocation5], 1 }
 0x424   :  { %781 = vsyncpa [#allocation5 + $0x1], 1 }
 0x425   :  { %782 = vsyncmov [#allocation3] }
 0x428   :  { %s783_s29 = vpop.sfrf %782 }
 0x429   :  { %p957_p4 = scmp.ne.s32.totalorder %s783_s29, 0 }
 0x42b   :  { %787 = shalt.err (%p957_p4)  }
 0x42c   :  { %789 = vsyncmov [#allocation3 + $0x1] }
 0x42f   :  { %s790_s8 = vpop.sfrf %789 }
 0x430   :  { %p958_p3 = scmp.ne.s32.totalorder %s790_s8, 0 }
 0x432   :  { %794 = shalt.err (%p958_p3)  }
 0x433   :  { %796 = vsyncmov [#allocation3 + $0x2] }
 0x436   :  { %s797_s9 = vpop.sfrf %796 }
 0x437   :  { %p959_p8 = scmp.ne.s32.totalorder %s797_s9, 0 }
 0x439   :  { %801 = shalt.err (%p959_p8)  }
 0x43a   :  { %803 = vsyncmov [#allocation3 + $0x3] }
 0x43d   :  { %s804_s13 = vpop.sfrf %803 }
 0x43e   :  { %p960_p0 = scmp.ne.s32.totalorder %s804_s13, 0 }
 0x440   :  { %808 = shalt.err (%p960_p0)  }
 0x441   :  { %810 = vsyncmov [#allocation3 + $0x4] }
 0x444   :  { %s811_s26 = vpop.sfrf %810 }
 0x445   :  { %p961_p13 = scmp.ne.s32.totalorder %s811_s26, 0 }
 0x447   :  { %815 = shalt.err (%p961_p13)  }
 0x448   :  { %817 = vsyncmov [#allocation3 + $0x5] }
 0x44b   :  { %s818_s0 = vpop.sfrf %817 }
 0x44c   :  { %p962_p1 = scmp.ne.s32.totalorder %s818_s0, 0 }
 0x44e   :  { %822 = shalt.err (%p962_p1)  }

</bundles_post_ra>
